<compile_context>
chip_gen: v6e
topology: v6e:2x2x1
jax: 0.10.0
libtpu: 0.0.40
codegen_flags: <defaults>
</compile_context>

<pallas_src>
import functools

import jax
import jax.numpy as jnp
from jax.experimental import pallas as pl
from jax.experimental.pallas import tpu as pltpu


def _tap_offsets(W):
    """Flattened-plane offsets of the 9 taps of a 3x3 conv (t = dy*3 + dx)."""
    return tuple((dy - 1) * W + (dx - 1) for dy in range(3) for dx in range(3))


def _build_masks(H, W):
    """(9, 1, H*W) f32 validity masks (zero padding) for the 9 conv taps.

    mask[t, 0, p] == 1.0 iff the source pixel p + off(t) is a valid in-image
    neighbour of p (this also kills the roll wrap-around lanes).
    """
    HW = H * W
    idx = jnp.arange(HW, dtype=jnp.int32)
    col = idx % W
    ones = jnp.ones((HW,), dtype=bool)
    vert = [idx >= W, ones, idx < (H - 1) * W]      # source row-1 / row / row+1
    horiz = [col >= 1, ones, col <= W - 2]          # source col-1 / col / col+1
    rows = []
    for dy in range(3):
        for dx in range(3):
            rows.append((vert[dy] & horiz[dx]).astype(jnp.float32))
    return jnp.stack(rows, axis=0).reshape(9, 1, HW)


def _weight_cols(w, scale=1.0):
    """OIHW (C_out, C_in, 3, 3) -> (9*C_in, C_out, 1) broadcastable columns.

    Row (t*C_in + ci) holds w[:, ci, dy, dx] (all output channels) as a
    (C_out, 1) column, so a single VPU multiply broadcasts it across lanes
    while the tap row broadcasts across sublanes.
    """
    C_out, C_in, _, _ = w.shape
    wt = (scale * w).astype(jnp.float32).reshape(C_out, C_in, 9)
    wt = jnp.transpose(wt, (2, 1, 0))               # (t, ci, co)
    return wt.reshape(9 * C_in, C_out, 1)


def _pick_block_images(N, C, HW, target_bytes=2 << 20):
    """Images per grid step: ~target_bytes per block, grid >= 2, B | N."""
    per_img = C * HW * 4
    cap = max(1, target_bytes // per_img)
    if N >= 2:
        cap = min(cap, N // 2)      # keep >= 2 grid steps (v7x has 2 TCs)
    cap = int(max(1, min(cap, N)))
    best = 1
    for d in range(1, cap + 1):
        if N % d == 0:
            best = d
    return best


def resb_kernel(x_ref, mask_ref, w1_ref, b1_ref, w2_ref, b2_ref, o_ref, *, H, W):
    """One block of B images per grid step.

    x_ref : (B, C, H*W) f32 VMEM   lane-dense input channel slabs
    mask  : (9, 1, H*W) f32 VMEM   per-tap boundary masks (resident)
    w*    : (9*C, C, 1) f32 VMEM   per-(tap, ci) output-channel weight columns
    b*    : (C, 1)      f32 VMEM   bias columns (conv2: 0.1 folded in)
    o_ref : (B, C, H*W) f32 VMEM   output
    """
    B, C, HW = x_ref.shape
    offs = _tap_offsets(W)

    def conv3x3(slab, w_ref, b_ref):
        """3x3 conv of a (C, HW) slab -> (C, HW), tap-major, channel-vectorized."""
        accs = [None] * C                      # one chain per input channel
        for t, off in enumerate(offs):
            # One slab-wide roll + mask per tap (shared by all channels).
            rolled = slab if off == 0 else pltpu.roll(slab, (-off) % HW, axis=1)
            if t != 4:                         # centre tap needs no mask
                rolled = rolled * mask_ref[t]
            for ci in range(C):
                # (1, HW) tap row  x  (C_out, 1) weight column -> (C_out, HW)
                contrib = rolled[ci:ci + 1, :] * w_ref[t * C + ci]
                accs[ci] = contrib if accs[ci] is None else accs[ci] + contrib
        total = accs[0]
        for a in accs[1:]:
            total = total + a
        return total + b_ref[...]

    def one_image(b):
        x_img = x_ref[b].astype(jnp.float32)                 # (C, HW)
        h = jnp.maximum(conv3x3(x_img, w1_ref, b1_ref), 0.0)  # conv1 + ReLU
        y = conv3x3(h, w2_ref, b2_ref) + x_img                # conv2*0.1 + res
        o_ref[b] = y.astype(o_ref.dtype)                      # one full store

    if B <= 8:
        for b in range(B):          # tiny blocks: unroll for LLO visibility
            one_image(b)
    else:
        pl.loop(0, B)(one_image)    # large blocks: bounded trace / vreg usage


def resb_pallas(x, w1, b1, w2, b2):
    """x: (N, C, H, W) f32; w*: (C, C, 3, 3) f32 (PyTorch OIHW); b*: (C,)."""
    N, C, H, W = x.shape
    HW = H * W
    B = _pick_block_images(N, C, HW)

    x2 = x.reshape(N, C, HW).astype(jnp.float32)     # metadata-only reshape
    masks = _build_masks(H, W)
    w1c = _weight_cols(w1)
    b1c = b1.astype(jnp.float32).reshape(C, 1)
    # Fold the 0.1 residual scale into conv2's parameters at trace time.
    w2c = _weight_cols(w2, scale=0.1)
    b2c = (0.1 * b2).astype(jnp.float32).reshape(C, 1)

    kernel = functools.partial(resb_kernel, H=H, W=W)
    const3 = lambda n: (0, 0, 0)
    const2 = lambda n: (0, 0)

    out = pl.pallas_call(
        kernel,
        out_shape=jax.ShapeDtypeStruct((N, C, HW), jnp.float32),
        grid=(N // B,),
        in_specs=[
            pl.BlockSpec((B, C, HW), lambda n: (n, 0, 0)),   # x block
            pl.BlockSpec((9, 1, HW), const3),                # masks (resident)
            pl.BlockSpec((9 * C, C, 1), const3),             # conv1 weights
            pl.BlockSpec((C, 1), const2),                    # conv1 bias
            pl.BlockSpec((9 * C, C, 1), const3),             # conv2 weights * 0.1
            pl.BlockSpec((C, 1), const2),                    # conv2 bias * 0.1
        ],
        out_specs=pl.BlockSpec((B, C, HW), lambda n: (n, 0, 0)),
        compiler_params=pltpu.CompilerParams(
            dimension_semantics=("parallel",),     # megacore-shard over blocks
            vmem_limit_bytes=48 * 1024 * 1024,     # safe on v7x (64 MiB phys)
        ),
    )(x2, masks, w1c, b1c, w2c, b2c)

    return out.reshape(N, C, H, W)


# ---------------- pure-JAX reference (for verification only) ----------------
def _conv3x3_ref(x, w, b):
    y = jax.lax.conv_general_dilated(
        x, w, window_strides=(1, 1), padding="SAME",
        dimension_numbers=("NCHW", "OIHW", "NCHW"))
    return y + b[None, :, None, None]


def resb_ref(x, w1, b1, w2, b2):
    h = jax.nn.relu(_conv3x3_ref(x, w1, b1))
    return 0.1 * _conv3x3_ref(h, w2, b2) + x


if __name__ == "__main__":
    N, C, H, W = 2, 4, 16, 16            # n_feat = 4
    key = jax.random.PRNGKey(0)
    kx, kw1, kb1, kw2, kb2 = jax.random.split(key, 5)

    x = jax.random.normal(kx, (N, C, H, W), jnp.float32)
    w1 = 0.1 * jax.random.normal(kw1, (C, C, 3, 3), jnp.float32)
    b1 = 0.1 * jax.random.normal(kb1, (C,), jnp.float32)
    w2 = 0.1 * jax.random.normal(kw2, (C, C, 3, 3), jnp.float32)
    b2 = 0.1 * jax.random.normal(kb2, (C,), jnp.float32)

    out = jax.block_until_ready(resb_pallas(x, w1, b1, w2, b2))
    ref = jax.block_until_ready(resb_ref(x, w1, b1, w2, b2))

    assert out.shape == (N, C, H, W)
    err = float(jnp.max(jnp.abs(out - ref)))
    assert err < 1e-4, err
    print("KERNEL_OK")
</pallas_src>

<mosaic_0001>
module attributes {stable_mosaic.version = 11 : i64} {
  func.func @resb_kernel(%arg0: i32, %arg1: memref<1x4x256xf32, #tpu.memory_space<vmem>>, %arg2: memref<9x1x256xf32, #tpu.memory_space<vmem>>, %arg3: memref<36x4x1xf32, #tpu.memory_space<vmem>>, %arg4: memref<4x1xf32, #tpu.memory_space<vmem>>, %arg5: memref<36x4x1xf32, #tpu.memory_space<vmem>>, %arg6: memref<4x1xf32, #tpu.memory_space<vmem>>, %arg7: memref<1x4x256xf32, #tpu.memory_space<vmem>>) attributes {dimension_semantics = [#tpu.dimension_semantics<parallel>], iteration_bounds = array<i64: 2>, scalar_prefetch = 0 : i64, scratch_operands = 0 : i64, tpu.core_type = #tpu.core_type<tc>, window_params = [{transform_indices = @transform_0, window_bounds = array<i64: 1, 4, 256>}, {pipeline_mode = #tpu.pipeline_mode<synchronous>, transform_indices = @transform_1, window_bounds = array<i64: 9, 1, 256>}, {pipeline_mode = #tpu.pipeline_mode<synchronous>, transform_indices = @transform_2, window_bounds = array<i64: 36, 4, 1>}, {pipeline_mode = #tpu.pipeline_mode<synchronous>, transform_indices = @transform_3, window_bounds = array<i64: 4, 1>}, {pipeline_mode = #tpu.pipeline_mode<synchronous>, transform_indices = @transform_4, window_bounds = array<i64: 36, 4, 1>}, {pipeline_mode = #tpu.pipeline_mode<synchronous>, transform_indices = @transform_5, window_bounds = array<i64: 4, 1>}, {transform_indices = @transform_6, window_bounds = array<i64: 1, 4, 256>}]} {
    %c0 = arith.constant 0 : index
    %c0_0 = arith.constant 0 : index
    %c0_1 = arith.constant 0 : index
    %0 = vector.load %arg1[%c0, %c0_0, %c0_1] : memref<1x4x256xf32, #tpu.memory_space<vmem>>, vector<1x4x256xf32>
    %1 = vector.shape_cast %0 : vector<1x4x256xf32> to vector<4x256xf32>
    %c17_i32 = arith.constant 17 : i32
    %2 = tpu.dynamic_rotate %1 by %c17_i32 dim 1 : vector<4x256xf32>, i32 -> vector<4x256xf32>
    %c0_2 = arith.constant 0 : index
    %c0_3 = arith.constant 0 : index
    %c0_4 = arith.constant 0 : index
    %3 = vector.load %arg2[%c0_2, %c0_3, %c0_4] : memref<9x1x256xf32, #tpu.memory_space<vmem>>, vector<1x1x256xf32>
    %4 = vector.shape_cast %3 : vector<1x1x256xf32> to vector<1x256xf32>
    %5 = vector.broadcast %4 : vector<1x256xf32> to vector<4x256xf32>
    %6 = arith.mulf %2, %5 : vector<4x256xf32>
    %7 = vector.extract_strided_slice %6 {offsets = [0, 0], sizes = [1, 256], strides = [1, 1]} : vector<4x256xf32> to vector<1x256xf32>
    %c0_5 = arith.constant 0 : index
    %c0_6 = arith.constant 0 : index
    %c0_7 = arith.constant 0 : index
    %8 = vector.load %arg3[%c0_5, %c0_6, %c0_7] : memref<36x4x1xf32, #tpu.memory_space<vmem>>, vector<1x4x1xf32>
    %9 = vector.shape_cast %8 : vector<1x4x1xf32> to vector<4x1xf32>
    %10 = vector.broadcast %7 : vector<1x256xf32> to vector<4x256xf32>
    %11 = vector.broadcast %9 : vector<4x1xf32> to vector<4x256xf32>
    %12 = arith.mulf %10, %11 : vector<4x256xf32>
    %13 = vector.extract_strided_slice %6 {offsets = [1, 0], sizes = [1, 256], strides = [1, 1]} : vector<4x256xf32> to vector<1x256xf32>
    %c1 = arith.constant 1 : index
    %c0_8 = arith.constant 0 : index
    %c0_9 = arith.constant 0 : index
    %14 = vector.load %arg3[%c1, %c0_8, %c0_9] : memref<36x4x1xf32, #tpu.memory_space<vmem>>, vector<1x4x1xf32>
    %15 = vector.shape_cast %14 : vector<1x4x1xf32> to vector<4x1xf32>
    %16 = vector.broadcast %13 : vector<1x256xf32> to vector<4x256xf32>
    %17 = vector.broadcast %15 : vector<4x1xf32> to vector<4x256xf32>
    %18 = arith.mulf %16, %17 : vector<4x256xf32>
    %19 = vector.extract_strided_slice %6 {offsets = [2, 0], sizes = [1, 256], strides = [1, 1]} : vector<4x256xf32> to vector<1x256xf32>
    %c2 = arith.constant 2 : index
    %c0_10 = arith.constant 0 : index
    %c0_11 = arith.constant 0 : index
    %20 = vector.load %arg3[%c2, %c0_10, %c0_11] : memref<36x4x1xf32, #tpu.memory_space<vmem>>, vector<1x4x1xf32>
    %21 = vector.shape_cast %20 : vector<1x4x1xf32> to vector<4x1xf32>
    %22 = vector.broadcast %19 : vector<1x256xf32> to vector<4x256xf32>
    %23 = vector.broadcast %21 : vector<4x1xf32> to vector<4x256xf32>
    %24 = arith.mulf %22, %23 : vector<4x256xf32>
    %25 = vector.extract_strided_slice %6 {offsets = [3, 0], sizes = [1, 256], strides = [1, 1]} : vector<4x256xf32> to vector<1x256xf32>
    %c3 = arith.constant 3 : index
    %c0_12 = arith.constant 0 : index
    %c0_13 = arith.constant 0 : index
    %26 = vector.load %arg3[%c3, %c0_12, %c0_13] : memref<36x4x1xf32, #tpu.memory_space<vmem>>, vector<1x4x1xf32>
    %27 = vector.shape_cast %26 : vector<1x4x1xf32> to vector<4x1xf32>
    %28 = vector.broadcast %25 : vector<1x256xf32> to vector<4x256xf32>
    %29 = vector.broadcast %27 : vector<4x1xf32> to vector<4x256xf32>
    %30 = arith.mulf %28, %29 : vector<4x256xf32>
    %c16_i32 = arith.constant 16 : i32
    %31 = tpu.dynamic_rotate %1 by %c16_i32 dim 1 : vector<4x256xf32>, i32 -> vector<4x256xf32>
    %c1_14 = arith.constant 1 : index
    %c0_15 = arith.constant 0 : index
    %c0_16 = arith.constant 0 : index
    %32 = vector.load %arg2[%c1_14, %c0_15, %c0_16] : memref<9x1x256xf32, #tpu.memory_space<vmem>>, vector<1x1x256xf32>
    %33 = vector.shape_cast %32 : vector<1x1x256xf32> to vector<1x256xf32>
    %34 = vector.broadcast %33 : vector<1x256xf32> to vector<4x256xf32>
    %35 = arith.mulf %31, %34 : vector<4x256xf32>
    %36 = vector.extract_strided_slice %35 {offsets = [0, 0], sizes = [1, 256], strides = [1, 1]} : vector<4x256xf32> to vector<1x256xf32>
    %c4 = arith.constant 4 : index
    %c0_17 = arith.constant 0 : index
    %c0_18 = arith.constant 0 : index
    %37 = vector.load %arg3[%c4, %c0_17, %c0_18] : memref<36x4x1xf32, #tpu.memory_space<vmem>>, vector<1x4x1xf32>
    %38 = vector.shape_cast %37 : vector<1x4x1xf32> to vector<4x1xf32>
    %39 = vector.broadcast %36 : vector<1x256xf32> to vector<4x256xf32>
    %40 = vector.broadcast %38 : vector<4x1xf32> to vector<4x256xf32>
    %41 = arith.mulf %39, %40 : vector<4x256xf32>
    %42 = arith.addf %12, %41 : vector<4x256xf32>
    %43 = vector.extract_strided_slice %35 {offsets = [1, 0], sizes = [1, 256], strides = [1, 1]} : vector<4x256xf32> to vector<1x256xf32>
    %c5 = arith.constant 5 : index
    %c0_19 = arith.constant 0 : index
    %c0_20 = arith.constant 0 : index
    %44 = vector.load %arg3[%c5, %c0_19, %c0_20] : memref<36x4x1xf32, #tpu.memory_space<vmem>>, vector<1x4x1xf32>
    %45 = vector.shape_cast %44 : vector<1x4x1xf32> to vector<4x1xf32>
    %46 = vector.broadcast %43 : vector<1x256xf32> to vector<4x256xf32>
    %47 = vector.broadcast %45 : vector<4x1xf32> to vector<4x256xf32>
    %48 = arith.mulf %46, %47 : vector<4x256xf32>
    %49 = arith.addf %18, %48 : vector<4x256xf32>
    %50 = vector.extract_strided_slice %35 {offsets = [2, 0], sizes = [1, 256], strides = [1, 1]} : vector<4x256xf32> to vector<1x256xf32>
    %c6 = arith.constant 6 : index
    %c0_21 = arith.constant 0 : index
    %c0_22 = arith.constant 0 : index
    %51 = vector.load %arg3[%c6, %c0_21, %c0_22] : memref<36x4x1xf32, #tpu.memory_space<vmem>>, vector<1x4x1xf32>
    %52 = vector.shape_cast %51 : vector<1x4x1xf32> to vector<4x1xf32>
    %53 = vector.broadcast %50 : vector<1x256xf32> to vector<4x256xf32>
    %54 = vector.broadcast %52 : vector<4x1xf32> to vector<4x256xf32>
    %55 = arith.mulf %53, %54 : vector<4x256xf32>
    %56 = arith.addf %24, %55 : vector<4x256xf32>
    %57 = vector.extract_strided_slice %35 {offsets = [3, 0], sizes = [1, 256], strides = [1, 1]} : vector<4x256xf32> to vector<1x256xf32>
    %c7 = arith.constant 7 : index
    %c0_23 = arith.constant 0 : index
    %c0_24 = arith.constant 0 : index
    %58 = vector.load %arg3[%c7, %c0_23, %c0_24] : memref<36x4x1xf32, #tpu.memory_space<vmem>>, vector<1x4x1xf32>
    %59 = vector.shape_cast %58 : vector<1x4x1xf32> to vector<4x1xf32>
    %60 = vector.broadcast %57 : vector<1x256xf32> to vector<4x256xf32>
    %61 = vector.broadcast %59 : vector<4x1xf32> to vector<4x256xf32>
    %62 = arith.mulf %60, %61 : vector<4x256xf32>
    %63 = arith.addf %30, %62 : vector<4x256xf32>
    %c15_i32 = arith.constant 15 : i32
    %64 = tpu.dynamic_rotate %1 by %c15_i32 dim 1 : vector<4x256xf32>, i32 -> vector<4x256xf32>
    %c2_25 = arith.constant 2 : index
    %c0_26 = arith.constant 0 : index
    %c0_27 = arith.constant 0 : index
    %65 = vector.load %arg2[%c2_25, %c0_26, %c0_27] : memref<9x1x256xf32, #tpu.memory_space<vmem>>, vector<1x1x256xf32>
    %66 = vector.shape_cast %65 : vector<1x1x256xf32> to vector<1x256xf32>
    %67 = vector.broadcast %66 : vector<1x256xf32> to vector<4x256xf32>
    %68 = arith.mulf %64, %67 : vector<4x256xf32>
    %69 = vector.extract_strided_slice %68 {offsets = [0, 0], sizes = [1, 256], strides = [1, 1]} : vector<4x256xf32> to vector<1x256xf32>
    %c8 = arith.constant 8 : index
    %c0_28 = arith.constant 0 : index
    %c0_29 = arith.constant 0 : index
    %70 = vector.load %arg3[%c8, %c0_28, %c0_29] : memref<36x4x1xf32, #tpu.memory_space<vmem>>, vector<1x4x1xf32>
    %71 = vector.shape_cast %70 : vector<1x4x1xf32> to vector<4x1xf32>
    %72 = vector.broadcast %69 : vector<1x256xf32> to vector<4x256xf32>
    %73 = vector.broadcast %71 : vector<4x1xf32> to vector<4x256xf32>
    %74 = arith.mulf %72, %73 : vector<4x256xf32>
    %75 = arith.addf %42, %74 : vector<4x256xf32>
    %76 = vector.extract_strided_slice %68 {offsets = [1, 0], sizes = [1, 256], strides = [1, 1]} : vector<4x256xf32> to vector<1x256xf32>
    %c9 = arith.constant 9 : index
    %c0_30 = arith.constant 0 : index
    %c0_31 = arith.constant 0 : index
    %77 = vector.load %arg3[%c9, %c0_30, %c0_31] : memref<36x4x1xf32, #tpu.memory_space<vmem>>, vector<1x4x1xf32>
    %78 = vector.shape_cast %77 : vector<1x4x1xf32> to vector<4x1xf32>
    %79 = vector.broadcast %76 : vector<1x256xf32> to vector<4x256xf32>
    %80 = vector.broadcast %78 : vector<4x1xf32> to vector<4x256xf32>
    %81 = arith.mulf %79, %80 : vector<4x256xf32>
    %82 = arith.addf %49, %81 : vector<4x256xf32>
    %83 = vector.extract_strided_slice %68 {offsets = [2, 0], sizes = [1, 256], strides = [1, 1]} : vector<4x256xf32> to vector<1x256xf32>
    %c10 = arith.constant 10 : index
    %c0_32 = arith.constant 0 : index
    %c0_33 = arith.constant 0 : index
    %84 = vector.load %arg3[%c10, %c0_32, %c0_33] : memref<36x4x1xf32, #tpu.memory_space<vmem>>, vector<1x4x1xf32>
    %85 = vector.shape_cast %84 : vector<1x4x1xf32> to vector<4x1xf32>
    %86 = vector.broadcast %83 : vector<1x256xf32> to vector<4x256xf32>
    %87 = vector.broadcast %85 : vector<4x1xf32> to vector<4x256xf32>
    %88 = arith.mulf %86, %87 : vector<4x256xf32>
    %89 = arith.addf %56, %88 : vector<4x256xf32>
    %90 = vector.extract_strided_slice %68 {offsets = [3, 0], sizes = [1, 256], strides = [1, 1]} : vector<4x256xf32> to vector<1x256xf32>
    %c11 = arith.constant 11 : index
    %c0_34 = arith.constant 0 : index
    %c0_35 = arith.constant 0 : index
    %91 = vector.load %arg3[%c11, %c0_34, %c0_35] : memref<36x4x1xf32, #tpu.memory_space<vmem>>, vector<1x4x1xf32>
    %92 = vector.shape_cast %91 : vector<1x4x1xf32> to vector<4x1xf32>
    %93 = vector.broadcast %90 : vector<1x256xf32> to vector<4x256xf32>
    %94 = vector.broadcast %92 : vector<4x1xf32> to vector<4x256xf32>
    %95 = arith.mulf %93, %94 : vector<4x256xf32>
    %96 = arith.addf %63, %95 : vector<4x256xf32>
    %c1_i32 = arith.constant 1 : i32
    %97 = tpu.dynamic_rotate %1 by %c1_i32 dim 1 : vector<4x256xf32>, i32 -> vector<4x256xf32>
    %c3_36 = arith.constant 3 : index
    %c0_37 = arith.constant 0 : index
    %c0_38 = arith.constant 0 : index
    %98 = vector.load %arg2[%c3_36, %c0_37, %c0_38] : memref<9x1x256xf32, #tpu.memory_space<vmem>>, vector<1x1x256xf32>
    %99 = vector.shape_cast %98 : vector<1x1x256xf32> to vector<1x256xf32>
    %100 = vector.broadcast %99 : vector<1x256xf32> to vector<4x256xf32>
    %101 = arith.mulf %97, %100 : vector<4x256xf32>
    %102 = vector.extract_strided_slice %101 {offsets = [0, 0], sizes = [1, 256], strides = [1, 1]} : vector<4x256xf32> to vector<1x256xf32>
    %c12 = arith.constant 12 : index
    %c0_39 = arith.constant 0 : index
    %c0_40 = arith.constant 0 : index
    %103 = vector.load %arg3[%c12, %c0_39, %c0_40] : memref<36x4x1xf32, #tpu.memory_space<vmem>>, vector<1x4x1xf32>
    %104 = vector.shape_cast %103 : vector<1x4x1xf32> to vector<4x1xf32>
    %105 = vector.broadcast %102 : vector<1x256xf32> to vector<4x256xf32>
    %106 = vector.broadcast %104 : vector<4x1xf32> to vector<4x256xf32>
    %107 = arith.mulf %105, %106 : vector<4x256xf32>
    %108 = arith.addf %75, %107 : vector<4x256xf32>
    %109 = vector.extract_strided_slice %101 {offsets = [1, 0], sizes = [1, 256], strides = [1, 1]} : vector<4x256xf32> to vector<1x256xf32>
    %c13 = arith.constant 13 : index
    %c0_41 = arith.constant 0 : index
    %c0_42 = arith.constant 0 : index
    %110 = vector.load %arg3[%c13, %c0_41, %c0_42] : memref<36x4x1xf32, #tpu.memory_space<vmem>>, vector<1x4x1xf32>
    %111 = vector.shape_cast %110 : vector<1x4x1xf32> to vector<4x1xf32>
    %112 = vector.broadcast %109 : vector<1x256xf32> to vector<4x256xf32>
    %113 = vector.broadcast %111 : vector<4x1xf32> to vector<4x256xf32>
    %114 = arith.mulf %112, %113 : vector<4x256xf32>
    %115 = arith.addf %82, %114 : vector<4x256xf32>
    %116 = vector.extract_strided_slice %101 {offsets = [2, 0], sizes = [1, 256], strides = [1, 1]} : vector<4x256xf32> to vector<1x256xf32>
    %c14 = arith.constant 14 : index
    %c0_43 = arith.constant 0 : index
    %c0_44 = arith.constant 0 : index
    %117 = vector.load %arg3[%c14, %c0_43, %c0_44] : memref<36x4x1xf32, #tpu.memory_space<vmem>>, vector<1x4x1xf32>
    %118 = vector.shape_cast %117 : vector<1x4x1xf32> to vector<4x1xf32>
    %119 = vector.broadcast %116 : vector<1x256xf32> to vector<4x256xf32>
    %120 = vector.broadcast %118 : vector<4x1xf32> to vector<4x256xf32>
    %121 = arith.mulf %119, %120 : vector<4x256xf32>
    %122 = arith.addf %89, %121 : vector<4x256xf32>
    %123 = vector.extract_strided_slice %101 {offsets = [3, 0], sizes = [1, 256], strides = [1, 1]} : vector<4x256xf32> to vector<1x256xf32>
    %c15 = arith.constant 15 : index
    %c0_45 = arith.constant 0 : index
    %c0_46 = arith.constant 0 : index
    %124 = vector.load %arg3[%c15, %c0_45, %c0_46] : memref<36x4x1xf32, #tpu.memory_space<vmem>>, vector<1x4x1xf32>
    %125 = vector.shape_cast %124 : vector<1x4x1xf32> to vector<4x1xf32>
    %126 = vector.broadcast %123 : vector<1x256xf32> to vector<4x256xf32>
    %127 = vector.broadcast %125 : vector<4x1xf32> to vector<4x256xf32>
    %128 = arith.mulf %126, %127 : vector<4x256xf32>
    %129 = arith.addf %96, %128 : vector<4x256xf32>
    %130 = vector.extract_strided_slice %1 {offsets = [0, 0], sizes = [1, 256], strides = [1, 1]} : vector<4x256xf32> to vector<1x256xf32>
    %c16 = arith.constant 16 : index
    %c0_47 = arith.constant 0 : index
    %c0_48 = arith.constant 0 : index
    %131 = vector.load %arg3[%c16, %c0_47, %c0_48] : memref<36x4x1xf32, #tpu.memory_space<vmem>>, vector<1x4x1xf32>
    %132 = vector.shape_cast %131 : vector<1x4x1xf32> to vector<4x1xf32>
    %133 = vector.broadcast %130 : vector<1x256xf32> to vector<4x256xf32>
    %134 = vector.broadcast %132 : vector<4x1xf32> to vector<4x256xf32>
    %135 = arith.mulf %133, %134 : vector<4x256xf32>
    %136 = arith.addf %108, %135 : vector<4x256xf32>
    %137 = vector.extract_strided_slice %1 {offsets = [1, 0], sizes = [1, 256], strides = [1, 1]} : vector<4x256xf32> to vector<1x256xf32>
    %c17 = arith.constant 17 : index
    %c0_49 = arith.constant 0 : index
    %c0_50 = arith.constant 0 : index
    %138 = vector.load %arg3[%c17, %c0_49, %c0_50] : memref<36x4x1xf32, #tpu.memory_space<vmem>>, vector<1x4x1xf32>
    %139 = vector.shape_cast %138 : vector<1x4x1xf32> to vector<4x1xf32>
    %140 = vector.broadcast %137 : vector<1x256xf32> to vector<4x256xf32>
    %141 = vector.broadcast %139 : vector<4x1xf32> to vector<4x256xf32>
    %142 = arith.mulf %140, %141 : vector<4x256xf32>
    %143 = arith.addf %115, %142 : vector<4x256xf32>
    %144 = vector.extract_strided_slice %1 {offsets = [2, 0], sizes = [1, 256], strides = [1, 1]} : vector<4x256xf32> to vector<1x256xf32>
    %c18 = arith.constant 18 : index
    %c0_51 = arith.constant 0 : index
    %c0_52 = arith.constant 0 : index
    %145 = vector.load %arg3[%c18, %c0_51, %c0_52] : memref<36x4x1xf32, #tpu.memory_space<vmem>>, vector<1x4x1xf32>
    %146 = vector.shape_cast %145 : vector<1x4x1xf32> to vector<4x1xf32>
    %147 = vector.broadcast %144 : vector<1x256xf32> to vector<4x256xf32>
    %148 = vector.broadcast %146 : vector<4x1xf32> to vector<4x256xf32>
    %149 = arith.mulf %147, %148 : vector<4x256xf32>
    %150 = arith.addf %122, %149 : vector<4x256xf32>
    %151 = vector.extract_strided_slice %1 {offsets = [3, 0], sizes = [1, 256], strides = [1, 1]} : vector<4x256xf32> to vector<1x256xf32>
    %c19 = arith.constant 19 : index
    %c0_53 = arith.constant 0 : index
    %c0_54 = arith.constant 0 : index
    %152 = vector.load %arg3[%c19, %c0_53, %c0_54] : memref<36x4x1xf32, #tpu.memory_space<vmem>>, vector<1x4x1xf32>
    %153 = vector.shape_cast %152 : vector<1x4x1xf32> to vector<4x1xf32>
    %154 = vector.broadcast %151 : vector<1x256xf32> to vector<4x256xf32>
    %155 = vector.broadcast %153 : vector<4x1xf32> to vector<4x256xf32>
    %156 = arith.mulf %154, %155 : vector<4x256xf32>
    %157 = arith.addf %129, %156 : vector<4x256xf32>
    %c255_i32 = arith.constant 255 : i32
    %158 = tpu.dynamic_rotate %1 by %c255_i32 dim 1 : vector<4x256xf32>, i32 -> vector<4x256xf32>
    %c5_55 = arith.constant 5 : index
    %c0_56 = arith.constant 0 : index
    %c0_57 = arith.constant 0 : index
    %159 = vector.load %arg2[%c5_55, %c0_56, %c0_57] : memref<9x1x256xf32, #tpu.memory_space<vmem>>, vector<1x1x256xf32>
    %160 = vector.shape_cast %159 : vector<1x1x256xf32> to vector<1x256xf32>
    %161 = vector.broadcast %160 : vector<1x256xf32> to vector<4x256xf32>
    %162 = arith.mulf %158, %161 : vector<4x256xf32>
    %163 = vector.extract_strided_slice %162 {offsets = [0, 0], sizes = [1, 256], strides = [1, 1]} : vector<4x256xf32> to vector<1x256xf32>
    %c20 = arith.constant 20 : index
    %c0_58 = arith.constant 0 : index
    %c0_59 = arith.constant 0 : index
    %164 = vector.load %arg3[%c20, %c0_58, %c0_59] : memref<36x4x1xf32, #tpu.memory_space<vmem>>, vector<1x4x1xf32>
    %165 = vector.shape_cast %164 : vector<1x4x1xf32> to vector<4x1xf32>
    %166 = vector.broadcast %163 : vector<1x256xf32> to vector<4x256xf32>
    %167 = vector.broadcast %165 : vector<4x1xf32> to vector<4x256xf32>
    %168 = arith.mulf %166, %167 : vector<4x256xf32>
    %169 = arith.addf %136, %168 : vector<4x256xf32>
    %170 = vector.extract_strided_slice %162 {offsets = [1, 0], sizes = [1, 256], strides = [1, 1]} : vector<4x256xf32> to vector<1x256xf32>
    %c21 = arith.constant 21 : index
    %c0_60 = arith.constant 0 : index
    %c0_61 = arith.constant 0 : index
    %171 = vector.load %arg3[%c21, %c0_60, %c0_61] : memref<36x4x1xf32, #tpu.memory_space<vmem>>, vector<1x4x1xf32>
    %172 = vector.shape_cast %171 : vector<1x4x1xf32> to vector<4x1xf32>
    %173 = vector.broadcast %170 : vector<1x256xf32> to vector<4x256xf32>
    %174 = vector.broadcast %172 : vector<4x1xf32> to vector<4x256xf32>
    %175 = arith.mulf %173, %174 : vector<4x256xf32>
    %176 = arith.addf %143, %175 : vector<4x256xf32>
    %177 = vector.extract_strided_slice %162 {offsets = [2, 0], sizes = [1, 256], strides = [1, 1]} : vector<4x256xf32> to vector<1x256xf32>
    %c22 = arith.constant 22 : index
    %c0_62 = arith.constant 0 : index
    %c0_63 = arith.constant 0 : index
    %178 = vector.load %arg3[%c22, %c0_62, %c0_63] : memref<36x4x1xf32, #tpu.memory_space<vmem>>, vector<1x4x1xf32>
    %179 = vector.shape_cast %178 : vector<1x4x1xf32> to vector<4x1xf32>
    %180 = vector.broadcast %177 : vector<1x256xf32> to vector<4x256xf32>
    %181 = vector.broadcast %179 : vector<4x1xf32> to vector<4x256xf32>
    %182 = arith.mulf %180, %181 : vector<4x256xf32>
    %183 = arith.addf %150, %182 : vector<4x256xf32>
    %184 = vector.extract_strided_slice %162 {offsets = [3, 0], sizes = [1, 256], strides = [1, 1]} : vector<4x256xf32> to vector<1x256xf32>
    %c23 = arith.constant 23 : index
    %c0_64 = arith.constant 0 : index
    %c0_65 = arith.constant 0 : index
    %185 = vector.load %arg3[%c23, %c0_64, %c0_65] : memref<36x4x1xf32, #tpu.memory_space<vmem>>, vector<1x4x1xf32>
    %186 = vector.shape_cast %185 : vector<1x4x1xf32> to vector<4x1xf32>
    %187 = vector.broadcast %184 : vector<1x256xf32> to vector<4x256xf32>
    %188 = vector.broadcast %186 : vector<4x1xf32> to vector<4x256xf32>
    %189 = arith.mulf %187, %188 : vector<4x256xf32>
    %190 = arith.addf %157, %189 : vector<4x256xf32>
    %c241_i32 = arith.constant 241 : i32
    %191 = tpu.dynamic_rotate %1 by %c241_i32 dim 1 : vector<4x256xf32>, i32 -> vector<4x256xf32>
    %c6_66 = arith.constant 6 : index
    %c0_67 = arith.constant 0 : index
    %c0_68 = arith.constant 0 : index
    %192 = vector.load %arg2[%c6_66, %c0_67, %c0_68] : memref<9x1x256xf32, #tpu.memory_space<vmem>>, vector<1x1x256xf32>
    %193 = vector.shape_cast %192 : vector<1x1x256xf32> to vector<1x256xf32>
    %194 = vector.broadcast %193 : vector<1x256xf32> to vector<4x256xf32>
    %195 = arith.mulf %191, %194 : vector<4x256xf32>
    %196 = vector.extract_strided_slice %195 {offsets = [0, 0], sizes = [1, 256], strides = [1, 1]} : vector<4x256xf32> to vector<1x256xf32>
    %c24 = arith.constant 24 : index
    %c0_69 = arith.constant 0 : index
    %c0_70 = arith.constant 0 : index
    %197 = vector.load %arg3[%c24, %c0_69, %c0_70] : memref<36x4x1xf32, #tpu.memory_space<vmem>>, vector<1x4x1xf32>
    %198 = vector.shape_cast %197 : vector<1x4x1xf32> to vector<4x1xf32>
    %199 = vector.broadcast %196 : vector<1x256xf32> to vector<4x256xf32>
    %200 = vector.broadcast %198 : vector<4x1xf32> to vector<4x256xf32>
    %201 = arith.mulf %199, %200 : vector<4x256xf32>
    %202 = arith.addf %169, %201 : vector<4x256xf32>
    %203 = vector.extract_strided_slice %195 {offsets = [1, 0], sizes = [1, 256], strides = [1, 1]} : vector<4x256xf32> to vector<1x256xf32>
    %c25 = arith.constant 25 : index
    %c0_71 = arith.constant 0 : index
    %c0_72 = arith.constant 0 : index
    %204 = vector.load %arg3[%c25, %c0_71, %c0_72] : memref<36x4x1xf32, #tpu.memory_space<vmem>>, vector<1x4x1xf32>
    %205 = vector.shape_cast %204 : vector<1x4x1xf32> to vector<4x1xf32>
    %206 = vector.broadcast %203 : vector<1x256xf32> to vector<4x256xf32>
    %207 = vector.broadcast %205 : vector<4x1xf32> to vector<4x256xf32>
    %208 = arith.mulf %206, %207 : vector<4x256xf32>
    %209 = arith.addf %176, %208 : vector<4x256xf32>
    %210 = vector.extract_strided_slice %195 {offsets = [2, 0], sizes = [1, 256], strides = [1, 1]} : vector<4x256xf32> to vector<1x256xf32>
    %c26 = arith.constant 26 : index
    %c0_73 = arith.constant 0 : index
    %c0_74 = arith.constant 0 : index
    %211 = vector.load %arg3[%c26, %c0_73, %c0_74] : memref<36x4x1xf32, #tpu.memory_space<vmem>>, vector<1x4x1xf32>
    %212 = vector.shape_cast %211 : vector<1x4x1xf32> to vector<4x1xf32>
    %213 = vector.broadcast %210 : vector<1x256xf32> to vector<4x256xf32>
    %214 = vector.broadcast %212 : vector<4x1xf32> to vector<4x256xf32>
    %215 = arith.mulf %213, %214 : vector<4x256xf32>
    %216 = arith.addf %183, %215 : vector<4x256xf32>
    %217 = vector.extract_strided_slice %195 {offsets = [3, 0], sizes = [1, 256], strides = [1, 1]} : vector<4x256xf32> to vector<1x256xf32>
    %c27 = arith.constant 27 : index
    %c0_75 = arith.constant 0 : index
    %c0_76 = arith.constant 0 : index
    %218 = vector.load %arg3[%c27, %c0_75, %c0_76] : memref<36x4x1xf32, #tpu.memory_space<vmem>>, vector<1x4x1xf32>
    %219 = vector.shape_cast %218 : vector<1x4x1xf32> to vector<4x1xf32>
    %220 = vector.broadcast %217 : vector<1x256xf32> to vector<4x256xf32>
    %221 = vector.broadcast %219 : vector<4x1xf32> to vector<4x256xf32>
    %222 = arith.mulf %220, %221 : vector<4x256xf32>
    %223 = arith.addf %190, %222 : vector<4x256xf32>
    %c240_i32 = arith.constant 240 : i32
    %224 = tpu.dynamic_rotate %1 by %c240_i32 dim 1 : vector<4x256xf32>, i32 -> vector<4x256xf32>
    %c7_77 = arith.constant 7 : index
    %c0_78 = arith.constant 0 : index
    %c0_79 = arith.constant 0 : index
    %225 = vector.load %arg2[%c7_77, %c0_78, %c0_79] : memref<9x1x256xf32, #tpu.memory_space<vmem>>, vector<1x1x256xf32>
    %226 = vector.shape_cast %225 : vector<1x1x256xf32> to vector<1x256xf32>
    %227 = vector.broadcast %226 : vector<1x256xf32> to vector<4x256xf32>
    %228 = arith.mulf %224, %227 : vector<4x256xf32>
    %229 = vector.extract_strided_slice %228 {offsets = [0, 0], sizes = [1, 256], strides = [1, 1]} : vector<4x256xf32> to vector<1x256xf32>
    %c28 = arith.constant 28 : index
    %c0_80 = arith.constant 0 : index
    %c0_81 = arith.constant 0 : index
    %230 = vector.load %arg3[%c28, %c0_80, %c0_81] : memref<36x4x1xf32, #tpu.memory_space<vmem>>, vector<1x4x1xf32>
    %231 = vector.shape_cast %230 : vector<1x4x1xf32> to vector<4x1xf32>
    %232 = vector.broadcast %229 : vector<1x256xf32> to vector<4x256xf32>
    %233 = vector.broadcast %231 : vector<4x1xf32> to vector<4x256xf32>
    %234 = arith.mulf %232, %233 : vector<4x256xf32>
    %235 = arith.addf %202, %234 : vector<4x256xf32>
    %236 = vector.extract_strided_slice %228 {offsets = [1, 0], sizes = [1, 256], strides = [1, 1]} : vector<4x256xf32> to vector<1x256xf32>
    %c29 = arith.constant 29 : index
    %c0_82 = arith.constant 0 : index
    %c0_83 = arith.constant 0 : index
    %237 = vector.load %arg3[%c29, %c0_82, %c0_83] : memref<36x4x1xf32, #tpu.memory_space<vmem>>, vector<1x4x1xf32>
    %238 = vector.shape_cast %237 : vector<1x4x1xf32> to vector<4x1xf32>
    %239 = vector.broadcast %236 : vector<1x256xf32> to vector<4x256xf32>
    %240 = vector.broadcast %238 : vector<4x1xf32> to vector<4x256xf32>
    %241 = arith.mulf %239, %240 : vector<4x256xf32>
    %242 = arith.addf %209, %241 : vector<4x256xf32>
    %243 = vector.extract_strided_slice %228 {offsets = [2, 0], sizes = [1, 256], strides = [1, 1]} : vector<4x256xf32> to vector<1x256xf32>
    %c30 = arith.constant 30 : index
    %c0_84 = arith.constant 0 : index
    %c0_85 = arith.constant 0 : index
    %244 = vector.load %arg3[%c30, %c0_84, %c0_85] : memref<36x4x1xf32, #tpu.memory_space<vmem>>, vector<1x4x1xf32>
    %245 = vector.shape_cast %244 : vector<1x4x1xf32> to vector<4x1xf32>
    %246 = vector.broadcast %243 : vector<1x256xf32> to vector<4x256xf32>
    %247 = vector.broadcast %245 : vector<4x1xf32> to vector<4x256xf32>
    %248 = arith.mulf %246, %247 : vector<4x256xf32>
    %249 = arith.addf %216, %248 : vector<4x256xf32>
    %250 = vector.extract_strided_slice %228 {offsets = [3, 0], sizes = [1, 256], strides = [1, 1]} : vector<4x256xf32> to vector<1x256xf32>
    %c31 = arith.constant 31 : index
    %c0_86 = arith.constant 0 : index
    %c0_87 = arith.constant 0 : index
    %251 = vector.load %arg3[%c31, %c0_86, %c0_87] : memref<36x4x1xf32, #tpu.memory_space<vmem>>, vector<1x4x1xf32>
    %252 = vector.shape_cast %251 : vector<1x4x1xf32> to vector<4x1xf32>
    %253 = vector.broadcast %250 : vector<1x256xf32> to vector<4x256xf32>
    %254 = vector.broadcast %252 : vector<4x1xf32> to vector<4x256xf32>
    %255 = arith.mulf %253, %254 : vector<4x256xf32>
    %256 = arith.addf %223, %255 : vector<4x256xf32>
    %c239_i32 = arith.constant 239 : i32
    %257 = tpu.dynamic_rotate %1 by %c239_i32 dim 1 : vector<4x256xf32>, i32 -> vector<4x256xf32>
    %c8_88 = arith.constant 8 : index
    %c0_89 = arith.constant 0 : index
    %c0_90 = arith.constant 0 : index
    %258 = vector.load %arg2[%c8_88, %c0_89, %c0_90] : memref<9x1x256xf32, #tpu.memory_space<vmem>>, vector<1x1x256xf32>
    %259 = vector.shape_cast %258 : vector<1x1x256xf32> to vector<1x256xf32>
    %260 = vector.broadcast %259 : vector<1x256xf32> to vector<4x256xf32>
    %261 = arith.mulf %257, %260 : vector<4x256xf32>
    %262 = vector.extract_strided_slice %261 {offsets = [0, 0], sizes = [1, 256], strides = [1, 1]} : vector<4x256xf32> to vector<1x256xf32>
    %c32 = arith.constant 32 : index
    %c0_91 = arith.constant 0 : index
    %c0_92 = arith.constant 0 : index
    %263 = vector.load %arg3[%c32, %c0_91, %c0_92] : memref<36x4x1xf32, #tpu.memory_space<vmem>>, vector<1x4x1xf32>
    %264 = vector.shape_cast %263 : vector<1x4x1xf32> to vector<4x1xf32>
    %265 = vector.broadcast %262 : vector<1x256xf32> to vector<4x256xf32>
    %266 = vector.broadcast %264 : vector<4x1xf32> to vector<4x256xf32>
    %267 = arith.mulf %265, %266 : vector<4x256xf32>
    %268 = arith.addf %235, %267 : vector<4x256xf32>
    %269 = vector.extract_strided_slice %261 {offsets = [1, 0], sizes = [1, 256], strides = [1, 1]} : vector<4x256xf32> to vector<1x256xf32>
    %c33 = arith.constant 33 : index
    %c0_93 = arith.constant 0 : index
    %c0_94 = arith.constant 0 : index
    %270 = vector.load %arg3[%c33, %c0_93, %c0_94] : memref<36x4x1xf32, #tpu.memory_space<vmem>>, vector<1x4x1xf32>
    %271 = vector.shape_cast %270 : vector<1x4x1xf32> to vector<4x1xf32>
    %272 = vector.broadcast %269 : vector<1x256xf32> to vector<4x256xf32>
    %273 = vector.broadcast %271 : vector<4x1xf32> to vector<4x256xf32>
    %274 = arith.mulf %272, %273 : vector<4x256xf32>
    %275 = arith.addf %242, %274 : vector<4x256xf32>
    %276 = vector.extract_strided_slice %261 {offsets = [2, 0], sizes = [1, 256], strides = [1, 1]} : vector<4x256xf32> to vector<1x256xf32>
    %c34 = arith.constant 34 : index
    %c0_95 = arith.constant 0 : index
    %c0_96 = arith.constant 0 : index
    %277 = vector.load %arg3[%c34, %c0_95, %c0_96] : memref<36x4x1xf32, #tpu.memory_space<vmem>>, vector<1x4x1xf32>
    %278 = vector.shape_cast %277 : vector<1x4x1xf32> to vector<4x1xf32>
    %279 = vector.broadcast %276 : vector<1x256xf32> to vector<4x256xf32>
    %280 = vector.broadcast %278 : vector<4x1xf32> to vector<4x256xf32>
    %281 = arith.mulf %279, %280 : vector<4x256xf32>
    %282 = arith.addf %249, %281 : vector<4x256xf32>
    %283 = vector.extract_strided_slice %261 {offsets = [3, 0], sizes = [1, 256], strides = [1, 1]} : vector<4x256xf32> to vector<1x256xf32>
    %c35 = arith.constant 35 : index
    %c0_97 = arith.constant 0 : index
    %c0_98 = arith.constant 0 : index
    %284 = vector.load %arg3[%c35, %c0_97, %c0_98] : memref<36x4x1xf32, #tpu.memory_space<vmem>>, vector<1x4x1xf32>
    %285 = vector.shape_cast %284 : vector<1x4x1xf32> to vector<4x1xf32>
    %286 = vector.broadcast %283 : vector<1x256xf32> to vector<4x256xf32>
    %287 = vector.broadcast %285 : vector<4x1xf32> to vector<4x256xf32>
    %288 = arith.mulf %286, %287 : vector<4x256xf32>
    %289 = arith.addf %256, %288 : vector<4x256xf32>
    %290 = arith.addf %268, %275 : vector<4x256xf32>
    %291 = arith.addf %290, %282 : vector<4x256xf32>
    %292 = arith.addf %291, %289 : vector<4x256xf32>
    %c0_99 = arith.constant 0 : index
    %c0_100 = arith.constant 0 : index
    %293 = vector.load %arg4[%c0_99, %c0_100] : memref<4x1xf32, #tpu.memory_space<vmem>>, vector<4x1xf32>
    %294 = vector.broadcast %293 : vector<4x1xf32> to vector<4x256xf32>
    %295 = arith.addf %292, %294 : vector<4x256xf32>
    %cst = arith.constant 0.000000e+00 : f32
    %296 = vector.broadcast %cst : f32 to vector<4x256xf32>
    %297 = arith.maximumf %295, %296 : vector<4x256xf32>
    %c17_i32_101 = arith.constant 17 : i32
    %298 = tpu.dynamic_rotate %297 by %c17_i32_101 dim 1 : vector<4x256xf32>, i32 -> vector<4x256xf32>
    %c0_102 = arith.constant 0 : index
    %c0_103 = arith.constant 0 : index
    %c0_104 = arith.constant 0 : index
    %299 = vector.load %arg2[%c0_102, %c0_103, %c0_104] : memref<9x1x256xf32, #tpu.memory_space<vmem>>, vector<1x1x256xf32>
    %300 = vector.shape_cast %299 : vector<1x1x256xf32> to vector<1x256xf32>
    %301 = vector.broadcast %300 : vector<1x256xf32> to vector<4x256xf32>
    %302 = arith.mulf %298, %301 : vector<4x256xf32>
    %303 = vector.extract_strided_slice %302 {offsets = [0, 0], sizes = [1, 256], strides = [1, 1]} : vector<4x256xf32> to vector<1x256xf32>
    %c0_105 = arith.constant 0 : index
    %c0_106 = arith.constant 0 : index
    %c0_107 = arith.constant 0 : index
    %304 = vector.load %arg5[%c0_105, %c0_106, %c0_107] : memref<36x4x1xf32, #tpu.memory_space<vmem>>, vector<1x4x1xf32>
    %305 = vector.shape_cast %304 : vector<1x4x1xf32> to vector<4x1xf32>
    %306 = vector.broadcast %303 : vector<1x256xf32> to vector<4x256xf32>
    %307 = vector.broadcast %305 : vector<4x1xf32> to vector<4x256xf32>
    %308 = arith.mulf %306, %307 : vector<4x256xf32>
    %309 = vector.extract_strided_slice %302 {offsets = [1, 0], sizes = [1, 256], strides = [1, 1]} : vector<4x256xf32> to vector<1x256xf32>
    %c1_108 = arith.constant 1 : index
    %c0_109 = arith.constant 0 : index
    %c0_110 = arith.constant 0 : index
    %310 = vector.load %arg5[%c1_108, %c0_109, %c0_110] : memref<36x4x1xf32, #tpu.memory_space<vmem>>, vector<1x4x1xf32>
    %311 = vector.shape_cast %310 : vector<1x4x1xf32> to vector<4x1xf32>
    %312 = vector.broadcast %309 : vector<1x256xf32> to vector<4x256xf32>
    %313 = vector.broadcast %311 : vector<4x1xf32> to vector<4x256xf32>
    %314 = arith.mulf %312, %313 : vector<4x256xf32>
    %315 = vector.extract_strided_slice %302 {offsets = [2, 0], sizes = [1, 256], strides = [1, 1]} : vector<4x256xf32> to vector<1x256xf32>
    %c2_111 = arith.constant 2 : index
    %c0_112 = arith.constant 0 : index
    %c0_113 = arith.constant 0 : index
    %316 = vector.load %arg5[%c2_111, %c0_112, %c0_113] : memref<36x4x1xf32, #tpu.memory_space<vmem>>, vector<1x4x1xf32>
    %317 = vector.shape_cast %316 : vector<1x4x1xf32> to vector<4x1xf32>
    %318 = vector.broadcast %315 : vector<1x256xf32> to vector<4x256xf32>
    %319 = vector.broadcast %317 : vector<4x1xf32> to vector<4x256xf32>
    %320 = arith.mulf %318, %319 : vector<4x256xf32>
    %321 = vector.extract_strided_slice %302 {offsets = [3, 0], sizes = [1, 256], strides = [1, 1]} : vector<4x256xf32> to vector<1x256xf32>
    %c3_114 = arith.constant 3 : index
    %c0_115 = arith.constant 0 : index
    %c0_116 = arith.constant 0 : index
    %322 = vector.load %arg5[%c3_114, %c0_115, %c0_116] : memref<36x4x1xf32, #tpu.memory_space<vmem>>, vector<1x4x1xf32>
    %323 = vector.shape_cast %322 : vector<1x4x1xf32> to vector<4x1xf32>
    %324 = vector.broadcast %321 : vector<1x256xf32> to vector<4x256xf32>
    %325 = vector.broadcast %323 : vector<4x1xf32> to vector<4x256xf32>
    %326 = arith.mulf %324, %325 : vector<4x256xf32>
    %c16_i32_117 = arith.constant 16 : i32
    %327 = tpu.dynamic_rotate %297 by %c16_i32_117 dim 1 : vector<4x256xf32>, i32 -> vector<4x256xf32>
    %c1_118 = arith.constant 1 : index
    %c0_119 = arith.constant 0 : index
    %c0_120 = arith.constant 0 : index
    %328 = vector.load %arg2[%c1_118, %c0_119, %c0_120] : memref<9x1x256xf32, #tpu.memory_space<vmem>>, vector<1x1x256xf32>
    %329 = vector.shape_cast %328 : vector<1x1x256xf32> to vector<1x256xf32>
    %330 = vector.broadcast %329 : vector<1x256xf32> to vector<4x256xf32>
    %331 = arith.mulf %327, %330 : vector<4x256xf32>
    %332 = vector.extract_strided_slice %331 {offsets = [0, 0], sizes = [1, 256], strides = [1, 1]} : vector<4x256xf32> to vector<1x256xf32>
    %c4_121 = arith.constant 4 : index
    %c0_122 = arith.constant 0 : index
    %c0_123 = arith.constant 0 : index
    %333 = vector.load %arg5[%c4_121, %c0_122, %c0_123] : memref<36x4x1xf32, #tpu.memory_space<vmem>>, vector<1x4x1xf32>
    %334 = vector.shape_cast %333 : vector<1x4x1xf32> to vector<4x1xf32>
    %335 = vector.broadcast %332 : vector<1x256xf32> to vector<4x256xf32>
    %336 = vector.broadcast %334 : vector<4x1xf32> to vector<4x256xf32>
    %337 = arith.mulf %335, %336 : vector<4x256xf32>
    %338 = arith.addf %308, %337 : vector<4x256xf32>
    %339 = vector.extract_strided_slice %331 {offsets = [1, 0], sizes = [1, 256], strides = [1, 1]} : vector<4x256xf32> to vector<1x256xf32>
    %c5_124 = arith.constant 5 : index
    %c0_125 = arith.constant 0 : index
    %c0_126 = arith.constant 0 : index
    %340 = vector.load %arg5[%c5_124, %c0_125, %c0_126] : memref<36x4x1xf32, #tpu.memory_space<vmem>>, vector<1x4x1xf32>
    %341 = vector.shape_cast %340 : vector<1x4x1xf32> to vector<4x1xf32>
    %342 = vector.broadcast %339 : vector<1x256xf32> to vector<4x256xf32>
    %343 = vector.broadcast %341 : vector<4x1xf32> to vector<4x256xf32>
    %344 = arith.mulf %342, %343 : vector<4x256xf32>
    %345 = arith.addf %314, %344 : vector<4x256xf32>
    %346 = vector.extract_strided_slice %331 {offsets = [2, 0], sizes = [1, 256], strides = [1, 1]} : vector<4x256xf32> to vector<1x256xf32>
    %c6_127 = arith.constant 6 : index
    %c0_128 = arith.constant 0 : index
    %c0_129 = arith.constant 0 : index
    %347 = vector.load %arg5[%c6_127, %c0_128, %c0_129] : memref<36x4x1xf32, #tpu.memory_space<vmem>>, vector<1x4x1xf32>
    %348 = vector.shape_cast %347 : vector<1x4x1xf32> to vector<4x1xf32>
    %349 = vector.broadcast %346 : vector<1x256xf32> to vector<4x256xf32>
    %350 = vector.broadcast %348 : vector<4x1xf32> to vector<4x256xf32>
    %351 = arith.mulf %349, %350 : vector<4x256xf32>
    %352 = arith.addf %320, %351 : vector<4x256xf32>
    %353 = vector.extract_strided_slice %331 {offsets = [3, 0], sizes = [1, 256], strides = [1, 1]} : vector<4x256xf32> to vector<1x256xf32>
    %c7_130 = arith.constant 7 : index
    %c0_131 = arith.constant 0 : index
    %c0_132 = arith.constant 0 : index
    %354 = vector.load %arg5[%c7_130, %c0_131, %c0_132] : memref<36x4x1xf32, #tpu.memory_space<vmem>>, vector<1x4x1xf32>
    %355 = vector.shape_cast %354 : vector<1x4x1xf32> to vector<4x1xf32>
    %356 = vector.broadcast %353 : vector<1x256xf32> to vector<4x256xf32>
    %357 = vector.broadcast %355 : vector<4x1xf32> to vector<4x256xf32>
    %358 = arith.mulf %356, %357 : vector<4x256xf32>
    %359 = arith.addf %326, %358 : vector<4x256xf32>
    %c15_i32_133 = arith.constant 15 : i32
    %360 = tpu.dynamic_rotate %297 by %c15_i32_133 dim 1 : vector<4x256xf32>, i32 -> vector<4x256xf32>
    %c2_134 = arith.constant 2 : index
    %c0_135 = arith.constant 0 : index
    %c0_136 = arith.constant 0 : index
    %361 = vector.load %arg2[%c2_134, %c0_135, %c0_136] : memref<9x1x256xf32, #tpu.memory_space<vmem>>, vector<1x1x256xf32>
    %362 = vector.shape_cast %361 : vector<1x1x256xf32> to vector<1x256xf32>
    %363 = vector.broadcast %362 : vector<1x256xf32> to vector<4x256xf32>
    %364 = arith.mulf %360, %363 : vector<4x256xf32>
    %365 = vector.extract_strided_slice %364 {offsets = [0, 0], sizes = [1, 256], strides = [1, 1]} : vector<4x256xf32> to vector<1x256xf32>
    %c8_137 = arith.constant 8 : index
    %c0_138 = arith.constant 0 : index
    %c0_139 = arith.constant 0 : index
    %366 = vector.load %arg5[%c8_137, %c0_138, %c0_139] : memref<36x4x1xf32, #tpu.memory_space<vmem>>, vector<1x4x1xf32>
    %367 = vector.shape_cast %366 : vector<1x4x1xf32> to vector<4x1xf32>
    %368 = vector.broadcast %365 : vector<1x256xf32> to vector<4x256xf32>
    %369 = vector.broadcast %367 : vector<4x1xf32> to vector<4x256xf32>
    %370 = arith.mulf %368, %369 : vector<4x256xf32>
    %371 = arith.addf %338, %370 : vector<4x256xf32>
    %372 = vector.extract_strided_slice %364 {offsets = [1, 0], sizes = [1, 256], strides = [1, 1]} : vector<4x256xf32> to vector<1x256xf32>
    %c9_140 = arith.constant 9 : index
    %c0_141 = arith.constant 0 : index
    %c0_142 = arith.constant 0 : index
    %373 = vector.load %arg5[%c9_140, %c0_141, %c0_142] : memref<36x4x1xf32, #tpu.memory_space<vmem>>, vector<1x4x1xf32>
    %374 = vector.shape_cast %373 : vector<1x4x1xf32> to vector<4x1xf32>
    %375 = vector.broadcast %372 : vector<1x256xf32> to vector<4x256xf32>
    %376 = vector.broadcast %374 : vector<4x1xf32> to vector<4x256xf32>
    %377 = arith.mulf %375, %376 : vector<4x256xf32>
    %378 = arith.addf %345, %377 : vector<4x256xf32>
    %379 = vector.extract_strided_slice %364 {offsets = [2, 0], sizes = [1, 256], strides = [1, 1]} : vector<4x256xf32> to vector<1x256xf32>
    %c10_143 = arith.constant 10 : index
    %c0_144 = arith.constant 0 : index
    %c0_145 = arith.constant 0 : index
    %380 = vector.load %arg5[%c10_143, %c0_144, %c0_145] : memref<36x4x1xf32, #tpu.memory_space<vmem>>, vector<1x4x1xf32>
    %381 = vector.shape_cast %380 : vector<1x4x1xf32> to vector<4x1xf32>
    %382 = vector.broadcast %379 : vector<1x256xf32> to vector<4x256xf32>
    %383 = vector.broadcast %381 : vector<4x1xf32> to vector<4x256xf32>
    %384 = arith.mulf %382, %383 : vector<4x256xf32>
    %385 = arith.addf %352, %384 : vector<4x256xf32>
    %386 = vector.extract_strided_slice %364 {offsets = [3, 0], sizes = [1, 256], strides = [1, 1]} : vector<4x256xf32> to vector<1x256xf32>
    %c11_146 = arith.constant 11 : index
    %c0_147 = arith.constant 0 : index
    %c0_148 = arith.constant 0 : index
    %387 = vector.load %arg5[%c11_146, %c0_147, %c0_148] : memref<36x4x1xf32, #tpu.memory_space<vmem>>, vector<1x4x1xf32>
    %388 = vector.shape_cast %387 : vector<1x4x1xf32> to vector<4x1xf32>
    %389 = vector.broadcast %386 : vector<1x256xf32> to vector<4x256xf32>
    %390 = vector.broadcast %388 : vector<4x1xf32> to vector<4x256xf32>
    %391 = arith.mulf %389, %390 : vector<4x256xf32>
    %392 = arith.addf %359, %391 : vector<4x256xf32>
    %c1_i32_149 = arith.constant 1 : i32
    %393 = tpu.dynamic_rotate %297 by %c1_i32_149 dim 1 : vector<4x256xf32>, i32 -> vector<4x256xf32>
    %c3_150 = arith.constant 3 : index
    %c0_151 = arith.constant 0 : index
    %c0_152 = arith.constant 0 : index
    %394 = vector.load %arg2[%c3_150, %c0_151, %c0_152] : memref<9x1x256xf32, #tpu.memory_space<vmem>>, vector<1x1x256xf32>
    %395 = vector.shape_cast %394 : vector<1x1x256xf32> to vector<1x256xf32>
    %396 = vector.broadcast %395 : vector<1x256xf32> to vector<4x256xf32>
    %397 = arith.mulf %393, %396 : vector<4x256xf32>
    %398 = vector.extract_strided_slice %397 {offsets = [0, 0], sizes = [1, 256], strides = [1, 1]} : vector<4x256xf32> to vector<1x256xf32>
    %c12_153 = arith.constant 12 : index
    %c0_154 = arith.constant 0 : index
    %c0_155 = arith.constant 0 : index
    %399 = vector.load %arg5[%c12_153, %c0_154, %c0_155] : memref<36x4x1xf32, #tpu.memory_space<vmem>>, vector<1x4x1xf32>
    %400 = vector.shape_cast %399 : vector<1x4x1xf32> to vector<4x1xf32>
    %401 = vector.broadcast %398 : vector<1x256xf32> to vector<4x256xf32>
    %402 = vector.broadcast %400 : vector<4x1xf32> to vector<4x256xf32>
    %403 = arith.mulf %401, %402 : vector<4x256xf32>
    %404 = arith.addf %371, %403 : vector<4x256xf32>
    %405 = vector.extract_strided_slice %397 {offsets = [1, 0], sizes = [1, 256], strides = [1, 1]} : vector<4x256xf32> to vector<1x256xf32>
    %c13_156 = arith.constant 13 : index
    %c0_157 = arith.constant 0 : index
    %c0_158 = arith.constant 0 : index
    %406 = vector.load %arg5[%c13_156, %c0_157, %c0_158] : memref<36x4x1xf32, #tpu.memory_space<vmem>>, vector<1x4x1xf32>
    %407 = vector.shape_cast %406 : vector<1x4x1xf32> to vector<4x1xf32>
    %408 = vector.broadcast %405 : vector<1x256xf32> to vector<4x256xf32>
    %409 = vector.broadcast %407 : vector<4x1xf32> to vector<4x256xf32>
    %410 = arith.mulf %408, %409 : vector<4x256xf32>
    %411 = arith.addf %378, %410 : vector<4x256xf32>
    %412 = vector.extract_strided_slice %397 {offsets = [2, 0], sizes = [1, 256], strides = [1, 1]} : vector<4x256xf32> to vector<1x256xf32>
    %c14_159 = arith.constant 14 : index
    %c0_160 = arith.constant 0 : index
    %c0_161 = arith.constant 0 : index
    %413 = vector.load %arg5[%c14_159, %c0_160, %c0_161] : memref<36x4x1xf32, #tpu.memory_space<vmem>>, vector<1x4x1xf32>
    %414 = vector.shape_cast %413 : vector<1x4x1xf32> to vector<4x1xf32>
    %415 = vector.broadcast %412 : vector<1x256xf32> to vector<4x256xf32>
    %416 = vector.broadcast %414 : vector<4x1xf32> to vector<4x256xf32>
    %417 = arith.mulf %415, %416 : vector<4x256xf32>
    %418 = arith.addf %385, %417 : vector<4x256xf32>
    %419 = vector.extract_strided_slice %397 {offsets = [3, 0], sizes = [1, 256], strides = [1, 1]} : vector<4x256xf32> to vector<1x256xf32>
    %c15_162 = arith.constant 15 : index
    %c0_163 = arith.constant 0 : index
    %c0_164 = arith.constant 0 : index
    %420 = vector.load %arg5[%c15_162, %c0_163, %c0_164] : memref<36x4x1xf32, #tpu.memory_space<vmem>>, vector<1x4x1xf32>
    %421 = vector.shape_cast %420 : vector<1x4x1xf32> to vector<4x1xf32>
    %422 = vector.broadcast %419 : vector<1x256xf32> to vector<4x256xf32>
    %423 = vector.broadcast %421 : vector<4x1xf32> to vector<4x256xf32>
    %424 = arith.mulf %422, %423 : vector<4x256xf32>
    %425 = arith.addf %392, %424 : vector<4x256xf32>
    %426 = vector.extract_strided_slice %297 {offsets = [0, 0], sizes = [1, 256], strides = [1, 1]} : vector<4x256xf32> to vector<1x256xf32>
    %c16_165 = arith.constant 16 : index
    %c0_166 = arith.constant 0 : index
    %c0_167 = arith.constant 0 : index
    %427 = vector.load %arg5[%c16_165, %c0_166, %c0_167] : memref<36x4x1xf32, #tpu.memory_space<vmem>>, vector<1x4x1xf32>
    %428 = vector.shape_cast %427 : vector<1x4x1xf32> to vector<4x1xf32>
    %429 = vector.broadcast %426 : vector<1x256xf32> to vector<4x256xf32>
    %430 = vector.broadcast %428 : vector<4x1xf32> to vector<4x256xf32>
    %431 = arith.mulf %429, %430 : vector<4x256xf32>
    %432 = arith.addf %404, %431 : vector<4x256xf32>
    %433 = vector.extract_strided_slice %297 {offsets = [1, 0], sizes = [1, 256], strides = [1, 1]} : vector<4x256xf32> to vector<1x256xf32>
    %c17_168 = arith.constant 17 : index
    %c0_169 = arith.constant 0 : index
    %c0_170 = arith.constant 0 : index
    %434 = vector.load %arg5[%c17_168, %c0_169, %c0_170] : memref<36x4x1xf32, #tpu.memory_space<vmem>>, vector<1x4x1xf32>
    %435 = vector.shape_cast %434 : vector<1x4x1xf32> to vector<4x1xf32>
    %436 = vector.broadcast %433 : vector<1x256xf32> to vector<4x256xf32>
    %437 = vector.broadcast %435 : vector<4x1xf32> to vector<4x256xf32>
    %438 = arith.mulf %436, %437 : vector<4x256xf32>
    %439 = arith.addf %411, %438 : vector<4x256xf32>
    %440 = vector.extract_strided_slice %297 {offsets = [2, 0], sizes = [1, 256], strides = [1, 1]} : vector<4x256xf32> to vector<1x256xf32>
    %c18_171 = arith.constant 18 : index
    %c0_172 = arith.constant 0 : index
    %c0_173 = arith.constant 0 : index
    %441 = vector.load %arg5[%c18_171, %c0_172, %c0_173] : memref<36x4x1xf32, #tpu.memory_space<vmem>>, vector<1x4x1xf32>
    %442 = vector.shape_cast %441 : vector<1x4x1xf32> to vector<4x1xf32>
    %443 = vector.broadcast %440 : vector<1x256xf32> to vector<4x256xf32>
    %444 = vector.broadcast %442 : vector<4x1xf32> to vector<4x256xf32>
    %445 = arith.mulf %443, %444 : vector<4x256xf32>
    %446 = arith.addf %418, %445 : vector<4x256xf32>
    %447 = vector.extract_strided_slice %297 {offsets = [3, 0], sizes = [1, 256], strides = [1, 1]} : vector<4x256xf32> to vector<1x256xf32>
    %c19_174 = arith.constant 19 : index
    %c0_175 = arith.constant 0 : index
    %c0_176 = arith.constant 0 : index
    %448 = vector.load %arg5[%c19_174, %c0_175, %c0_176] : memref<36x4x1xf32, #tpu.memory_space<vmem>>, vector<1x4x1xf32>
    %449 = vector.shape_cast %448 : vector<1x4x1xf32> to vector<4x1xf32>
    %450 = vector.broadcast %447 : vector<1x256xf32> to vector<4x256xf32>
    %451 = vector.broadcast %449 : vector<4x1xf32> to vector<4x256xf32>
    %452 = arith.mulf %450, %451 : vector<4x256xf32>
    %453 = arith.addf %425, %452 : vector<4x256xf32>
    %c255_i32_177 = arith.constant 255 : i32
    %454 = tpu.dynamic_rotate %297 by %c255_i32_177 dim 1 : vector<4x256xf32>, i32 -> vector<4x256xf32>
    %c5_178 = arith.constant 5 : index
    %c0_179 = arith.constant 0 : index
    %c0_180 = arith.constant 0 : index
    %455 = vector.load %arg2[%c5_178, %c0_179, %c0_180] : memref<9x1x256xf32, #tpu.memory_space<vmem>>, vector<1x1x256xf32>
    %456 = vector.shape_cast %455 : vector<1x1x256xf32> to vector<1x256xf32>
    %457 = vector.broadcast %456 : vector<1x256xf32> to vector<4x256xf32>
    %458 = arith.mulf %454, %457 : vector<4x256xf32>
    %459 = vector.extract_strided_slice %458 {offsets = [0, 0], sizes = [1, 256], strides = [1, 1]} : vector<4x256xf32> to vector<1x256xf32>
    %c20_181 = arith.constant 20 : index
    %c0_182 = arith.constant 0 : index
    %c0_183 = arith.constant 0 : index
    %460 = vector.load %arg5[%c20_181, %c0_182, %c0_183] : memref<36x4x1xf32, #tpu.memory_space<vmem>>, vector<1x4x1xf32>
    %461 = vector.shape_cast %460 : vector<1x4x1xf32> to vector<4x1xf32>
    %462 = vector.broadcast %459 : vector<1x256xf32> to vector<4x256xf32>
    %463 = vector.broadcast %461 : vector<4x1xf32> to vector<4x256xf32>
    %464 = arith.mulf %462, %463 : vector<4x256xf32>
    %465 = arith.addf %432, %464 : vector<4x256xf32>
    %466 = vector.extract_strided_slice %458 {offsets = [1, 0], sizes = [1, 256], strides = [1, 1]} : vector<4x256xf32> to vector<1x256xf32>
    %c21_184 = arith.constant 21 : index
    %c0_185 = arith.constant 0 : index
    %c0_186 = arith.constant 0 : index
    %467 = vector.load %arg5[%c21_184, %c0_185, %c0_186] : memref<36x4x1xf32, #tpu.memory_space<vmem>>, vector<1x4x1xf32>
    %468 = vector.shape_cast %467 : vector<1x4x1xf32> to vector<4x1xf32>
    %469 = vector.broadcast %466 : vector<1x256xf32> to vector<4x256xf32>
    %470 = vector.broadcast %468 : vector<4x1xf32> to vector<4x256xf32>
    %471 = arith.mulf %469, %470 : vector<4x256xf32>
    %472 = arith.addf %439, %471 : vector<4x256xf32>
    %473 = vector.extract_strided_slice %458 {offsets = [2, 0], sizes = [1, 256], strides = [1, 1]} : vector<4x256xf32> to vector<1x256xf32>
    %c22_187 = arith.constant 22 : index
    %c0_188 = arith.constant 0 : index
    %c0_189 = arith.constant 0 : index
    %474 = vector.load %arg5[%c22_187, %c0_188, %c0_189] : memref<36x4x1xf32, #tpu.memory_space<vmem>>, vector<1x4x1xf32>
    %475 = vector.shape_cast %474 : vector<1x4x1xf32> to vector<4x1xf32>
    %476 = vector.broadcast %473 : vector<1x256xf32> to vector<4x256xf32>
    %477 = vector.broadcast %475 : vector<4x1xf32> to vector<4x256xf32>
    %478 = arith.mulf %476, %477 : vector<4x256xf32>
    %479 = arith.addf %446, %478 : vector<4x256xf32>
    %480 = vector.extract_strided_slice %458 {offsets = [3, 0], sizes = [1, 256], strides = [1, 1]} : vector<4x256xf32> to vector<1x256xf32>
    %c23_190 = arith.constant 23 : index
    %c0_191 = arith.constant 0 : index
    %c0_192 = arith.constant 0 : index
    %481 = vector.load %arg5[%c23_190, %c0_191, %c0_192] : memref<36x4x1xf32, #tpu.memory_space<vmem>>, vector<1x4x1xf32>
    %482 = vector.shape_cast %481 : vector<1x4x1xf32> to vector<4x1xf32>
    %483 = vector.broadcast %480 : vector<1x256xf32> to vector<4x256xf32>
    %484 = vector.broadcast %482 : vector<4x1xf32> to vector<4x256xf32>
    %485 = arith.mulf %483, %484 : vector<4x256xf32>
    %486 = arith.addf %453, %485 : vector<4x256xf32>
    %c241_i32_193 = arith.constant 241 : i32
    %487 = tpu.dynamic_rotate %297 by %c241_i32_193 dim 1 : vector<4x256xf32>, i32 -> vector<4x256xf32>
    %c6_194 = arith.constant 6 : index
    %c0_195 = arith.constant 0 : index
    %c0_196 = arith.constant 0 : index
    %488 = vector.load %arg2[%c6_194, %c0_195, %c0_196] : memref<9x1x256xf32, #tpu.memory_space<vmem>>, vector<1x1x256xf32>
    %489 = vector.shape_cast %488 : vector<1x1x256xf32> to vector<1x256xf32>
    %490 = vector.broadcast %489 : vector<1x256xf32> to vector<4x256xf32>
    %491 = arith.mulf %487, %490 : vector<4x256xf32>
    %492 = vector.extract_strided_slice %491 {offsets = [0, 0], sizes = [1, 256], strides = [1, 1]} : vector<4x256xf32> to vector<1x256xf32>
    %c24_197 = arith.constant 24 : index
    %c0_198 = arith.constant 0 : index
    %c0_199 = arith.constant 0 : index
    %493 = vector.load %arg5[%c24_197, %c0_198, %c0_199] : memref<36x4x1xf32, #tpu.memory_space<vmem>>, vector<1x4x1xf32>
    %494 = vector.shape_cast %493 : vector<1x4x1xf32> to vector<4x1xf32>
    %495 = vector.broadcast %492 : vector<1x256xf32> to vector<4x256xf32>
    %496 = vector.broadcast %494 : vector<4x1xf32> to vector<4x256xf32>
    %497 = arith.mulf %495, %496 : vector<4x256xf32>
    %498 = arith.addf %465, %497 : vector<4x256xf32>
    %499 = vector.extract_strided_slice %491 {offsets = [1, 0], sizes = [1, 256], strides = [1, 1]} : vector<4x256xf32> to vector<1x256xf32>
    %c25_200 = arith.constant 25 : index
    %c0_201 = arith.constant 0 : index
    %c0_202 = arith.constant 0 : index
    %500 = vector.load %arg5[%c25_200, %c0_201, %c0_202] : memref<36x4x1xf32, #tpu.memory_space<vmem>>, vector<1x4x1xf32>
    %501 = vector.shape_cast %500 : vector<1x4x1xf32> to vector<4x1xf32>
    %502 = vector.broadcast %499 : vector<1x256xf32> to vector<4x256xf32>
    %503 = vector.broadcast %501 : vector<4x1xf32> to vector<4x256xf32>
    %504 = arith.mulf %502, %503 : vector<4x256xf32>
    %505 = arith.addf %472, %504 : vector<4x256xf32>
    %506 = vector.extract_strided_slice %491 {offsets = [2, 0], sizes = [1, 256], strides = [1, 1]} : vector<4x256xf32> to vector<1x256xf32>
    %c26_203 = arith.constant 26 : index
    %c0_204 = arith.constant 0 : index
    %c0_205 = arith.constant 0 : index
    %507 = vector.load %arg5[%c26_203, %c0_204, %c0_205] : memref<36x4x1xf32, #tpu.memory_space<vmem>>, vector<1x4x1xf32>
    %508 = vector.shape_cast %507 : vector<1x4x1xf32> to vector<4x1xf32>
    %509 = vector.broadcast %506 : vector<1x256xf32> to vector<4x256xf32>
    %510 = vector.broadcast %508 : vector<4x1xf32> to vector<4x256xf32>
    %511 = arith.mulf %509, %510 : vector<4x256xf32>
    %512 = arith.addf %479, %511 : vector<4x256xf32>
    %513 = vector.extract_strided_slice %491 {offsets = [3, 0], sizes = [1, 256], strides = [1, 1]} : vector<4x256xf32> to vector<1x256xf32>
    %c27_206 = arith.constant 27 : index
    %c0_207 = arith.constant 0 : index
    %c0_208 = arith.constant 0 : index
    %514 = vector.load %arg5[%c27_206, %c0_207, %c0_208] : memref<36x4x1xf32, #tpu.memory_space<vmem>>, vector<1x4x1xf32>
    %515 = vector.shape_cast %514 : vector<1x4x1xf32> to vector<4x1xf32>
    %516 = vector.broadcast %513 : vector<1x256xf32> to vector<4x256xf32>
    %517 = vector.broadcast %515 : vector<4x1xf32> to vector<4x256xf32>
    %518 = arith.mulf %516, %517 : vector<4x256xf32>
    %519 = arith.addf %486, %518 : vector<4x256xf32>
    %c240_i32_209 = arith.constant 240 : i32
    %520 = tpu.dynamic_rotate %297 by %c240_i32_209 dim 1 : vector<4x256xf32>, i32 -> vector<4x256xf32>
    %c7_210 = arith.constant 7 : index
    %c0_211 = arith.constant 0 : index
    %c0_212 = arith.constant 0 : index
    %521 = vector.load %arg2[%c7_210, %c0_211, %c0_212] : memref<9x1x256xf32, #tpu.memory_space<vmem>>, vector<1x1x256xf32>
    %522 = vector.shape_cast %521 : vector<1x1x256xf32> to vector<1x256xf32>
    %523 = vector.broadcast %522 : vector<1x256xf32> to vector<4x256xf32>
    %524 = arith.mulf %520, %523 : vector<4x256xf32>
    %525 = vector.extract_strided_slice %524 {offsets = [0, 0], sizes = [1, 256], strides = [1, 1]} : vector<4x256xf32> to vector<1x256xf32>
    %c28_213 = arith.constant 28 : index
    %c0_214 = arith.constant 0 : index
    %c0_215 = arith.constant 0 : index
    %526 = vector.load %arg5[%c28_213, %c0_214, %c0_215] : memref<36x4x1xf32, #tpu.memory_space<vmem>>, vector<1x4x1xf32>
    %527 = vector.shape_cast %526 : vector<1x4x1xf32> to vector<4x1xf32>
    %528 = vector.broadcast %525 : vector<1x256xf32> to vector<4x256xf32>
    %529 = vector.broadcast %527 : vector<4x1xf32> to vector<4x256xf32>
    %530 = arith.mulf %528, %529 : vector<4x256xf32>
    %531 = arith.addf %498, %530 : vector<4x256xf32>
    %532 = vector.extract_strided_slice %524 {offsets = [1, 0], sizes = [1, 256], strides = [1, 1]} : vector<4x256xf32> to vector<1x256xf32>
    %c29_216 = arith.constant 29 : index
    %c0_217 = arith.constant 0 : index
    %c0_218 = arith.constant 0 : index
    %533 = vector.load %arg5[%c29_216, %c0_217, %c0_218] : memref<36x4x1xf32, #tpu.memory_space<vmem>>, vector<1x4x1xf32>
    %534 = vector.shape_cast %533 : vector<1x4x1xf32> to vector<4x1xf32>
    %535 = vector.broadcast %532 : vector<1x256xf32> to vector<4x256xf32>
    %536 = vector.broadcast %534 : vector<4x1xf32> to vector<4x256xf32>
    %537 = arith.mulf %535, %536 : vector<4x256xf32>
    %538 = arith.addf %505, %537 : vector<4x256xf32>
    %539 = vector.extract_strided_slice %524 {offsets = [2, 0], sizes = [1, 256], strides = [1, 1]} : vector<4x256xf32> to vector<1x256xf32>
    %c30_219 = arith.constant 30 : index
    %c0_220 = arith.constant 0 : index
    %c0_221 = arith.constant 0 : index
    %540 = vector.load %arg5[%c30_219, %c0_220, %c0_221] : memref<36x4x1xf32, #tpu.memory_space<vmem>>, vector<1x4x1xf32>
    %541 = vector.shape_cast %540 : vector<1x4x1xf32> to vector<4x1xf32>
    %542 = vector.broadcast %539 : vector<1x256xf32> to vector<4x256xf32>
    %543 = vector.broadcast %541 : vector<4x1xf32> to vector<4x256xf32>
    %544 = arith.mulf %542, %543 : vector<4x256xf32>
    %545 = arith.addf %512, %544 : vector<4x256xf32>
    %546 = vector.extract_strided_slice %524 {offsets = [3, 0], sizes = [1, 256], strides = [1, 1]} : vector<4x256xf32> to vector<1x256xf32>
    %c31_222 = arith.constant 31 : index
    %c0_223 = arith.constant 0 : index
    %c0_224 = arith.constant 0 : index
    %547 = vector.load %arg5[%c31_222, %c0_223, %c0_224] : memref<36x4x1xf32, #tpu.memory_space<vmem>>, vector<1x4x1xf32>
    %548 = vector.shape_cast %547 : vector<1x4x1xf32> to vector<4x1xf32>
    %549 = vector.broadcast %546 : vector<1x256xf32> to vector<4x256xf32>
    %550 = vector.broadcast %548 : vector<4x1xf32> to vector<4x256xf32>
    %551 = arith.mulf %549, %550 : vector<4x256xf32>
    %552 = arith.addf %519, %551 : vector<4x256xf32>
    %c239_i32_225 = arith.constant 239 : i32
    %553 = tpu.dynamic_rotate %297 by %c239_i32_225 dim 1 : vector<4x256xf32>, i32 -> vector<4x256xf32>
    %c8_226 = arith.constant 8 : index
    %c0_227 = arith.constant 0 : index
    %c0_228 = arith.constant 0 : index
    %554 = vector.load %arg2[%c8_226, %c0_227, %c0_228] : memref<9x1x256xf32, #tpu.memory_space<vmem>>, vector<1x1x256xf32>
    %555 = vector.shape_cast %554 : vector<1x1x256xf32> to vector<1x256xf32>
    %556 = vector.broadcast %555 : vector<1x256xf32> to vector<4x256xf32>
    %557 = arith.mulf %553, %556 : vector<4x256xf32>
    %558 = vector.extract_strided_slice %557 {offsets = [0, 0], sizes = [1, 256], strides = [1, 1]} : vector<4x256xf32> to vector<1x256xf32>
    %c32_229 = arith.constant 32 : index
    %c0_230 = arith.constant 0 : index
    %c0_231 = arith.constant 0 : index
    %559 = vector.load %arg5[%c32_229, %c0_230, %c0_231] : memref<36x4x1xf32, #tpu.memory_space<vmem>>, vector<1x4x1xf32>
    %560 = vector.shape_cast %559 : vector<1x4x1xf32> to vector<4x1xf32>
    %561 = vector.broadcast %558 : vector<1x256xf32> to vector<4x256xf32>
    %562 = vector.broadcast %560 : vector<4x1xf32> to vector<4x256xf32>
    %563 = arith.mulf %561, %562 : vector<4x256xf32>
    %564 = arith.addf %531, %563 : vector<4x256xf32>
    %565 = vector.extract_strided_slice %557 {offsets = [1, 0], sizes = [1, 256], strides = [1, 1]} : vector<4x256xf32> to vector<1x256xf32>
    %c33_232 = arith.constant 33 : index
    %c0_233 = arith.constant 0 : index
    %c0_234 = arith.constant 0 : index
    %566 = vector.load %arg5[%c33_232, %c0_233, %c0_234] : memref<36x4x1xf32, #tpu.memory_space<vmem>>, vector<1x4x1xf32>
    %567 = vector.shape_cast %566 : vector<1x4x1xf32> to vector<4x1xf32>
    %568 = vector.broadcast %565 : vector<1x256xf32> to vector<4x256xf32>
    %569 = vector.broadcast %567 : vector<4x1xf32> to vector<4x256xf32>
    %570 = arith.mulf %568, %569 : vector<4x256xf32>
    %571 = arith.addf %538, %570 : vector<4x256xf32>
    %572 = vector.extract_strided_slice %557 {offsets = [2, 0], sizes = [1, 256], strides = [1, 1]} : vector<4x256xf32> to vector<1x256xf32>
    %c34_235 = arith.constant 34 : index
    %c0_236 = arith.constant 0 : index
    %c0_237 = arith.constant 0 : index
    %573 = vector.load %arg5[%c34_235, %c0_236, %c0_237] : memref<36x4x1xf32, #tpu.memory_space<vmem>>, vector<1x4x1xf32>
    %574 = vector.shape_cast %573 : vector<1x4x1xf32> to vector<4x1xf32>
    %575 = vector.broadcast %572 : vector<1x256xf32> to vector<4x256xf32>
    %576 = vector.broadcast %574 : vector<4x1xf32> to vector<4x256xf32>
    %577 = arith.mulf %575, %576 : vector<4x256xf32>
    %578 = arith.addf %545, %577 : vector<4x256xf32>
    %579 = vector.extract_strided_slice %557 {offsets = [3, 0], sizes = [1, 256], strides = [1, 1]} : vector<4x256xf32> to vector<1x256xf32>
    %c35_238 = arith.constant 35 : index
    %c0_239 = arith.constant 0 : index
    %c0_240 = arith.constant 0 : index
    %580 = vector.load %arg5[%c35_238, %c0_239, %c0_240] : memref<36x4x1xf32, #tpu.memory_space<vmem>>, vector<1x4x1xf32>
    %581 = vector.shape_cast %580 : vector<1x4x1xf32> to vector<4x1xf32>
    %582 = vector.broadcast %579 : vector<1x256xf32> to vector<4x256xf32>
    %583 = vector.broadcast %581 : vector<4x1xf32> to vector<4x256xf32>
    %584 = arith.mulf %582, %583 : vector<4x256xf32>
    %585 = arith.addf %552, %584 : vector<4x256xf32>
    %586 = arith.addf %564, %571 : vector<4x256xf32>
    %587 = arith.addf %586, %578 : vector<4x256xf32>
    %588 = arith.addf %587, %585 : vector<4x256xf32>
    %c0_241 = arith.constant 0 : index
    %c0_242 = arith.constant 0 : index
    %589 = vector.load %arg6[%c0_241, %c0_242] : memref<4x1xf32, #tpu.memory_space<vmem>>, vector<4x1xf32>
    %590 = vector.broadcast %589 : vector<4x1xf32> to vector<4x256xf32>
    %591 = arith.addf %588, %590 : vector<4x256xf32>
    %592 = arith.addf %591, %1 : vector<4x256xf32>
    %c0_243 = arith.constant 0 : index
    %c0_244 = arith.constant 0 : index
    %c0_245 = arith.constant 0 : index
    %593 = vector.load %arg7[%c0_243, %c0_244, %c0_245] : memref<1x4x256xf32, #tpu.memory_space<vmem>>, vector<1x4x256xf32>
    %594 = vector.shape_cast %593 : vector<1x4x256xf32> to vector<4x256xf32>
    %595 = vector.shape_cast %592 : vector<4x256xf32> to vector<1x4x256xf32>
    tpu.vector_store %arg7[%c0_243, %c0_244, %c0_245], %595 {strides = array<i32>} : memref<1x4x256xf32, #tpu.memory_space<vmem>>, vector<1x4x256xf32>,
    return
  }
  func.func @transform_0(%arg0: i32) -> (i32, i32, i32) {
    %c0_i32 = arith.constant 0 : i32
    %c0_i32_0 = arith.constant 0 : i32
    %c0_i32_1 = arith.constant 0 : i32
    return %arg0, %c0_i32, %c0_i32_0 : i32, i32, i32
  }
  func.func @transform_1(%arg0: i32) -> (i32, i32, i32) {
    %c0_i32 = arith.constant 0 : i32
    %c0_i32_0 = arith.constant 0 : i32
    %c0_i32_1 = arith.constant 0 : i32
    %c0_i32_2 = arith.constant 0 : i32
    return %c0_i32, %c0_i32_0, %c0_i32_1 : i32, i32, i32
  }
  func.func @transform_2(%arg0: i32) -> (i32, i32, i32) {
    %c0_i32 = arith.constant 0 : i32
    %c0_i32_0 = arith.constant 0 : i32
    %c0_i32_1 = arith.constant 0 : i32
    %c0_i32_2 = arith.constant 0 : i32
    return %c0_i32, %c0_i32_0, %c0_i32_1 : i32, i32, i32
  }
  func.func @transform_3(%arg0: i32) -> (i32, i32) {
    %c0_i32 = arith.constant 0 : i32
    %c0_i32_0 = arith.constant 0 : i32
    %c0_i32_1 = arith.constant 0 : i32
    return %c0_i32, %c0_i32_0 : i32, i32
  }
  func.func @transform_4(%arg0: i32) -> (i32, i32, i32) {
    %c0_i32 = arith.constant 0 : i32
    %c0_i32_0 = arith.constant 0 : i32
    %c0_i32_1 = arith.constant 0 : i32
    %c0_i32_2 = arith.constant 0 : i32
    return %c0_i32, %c0_i32_0, %c0_i32_1 : i32, i32, i32
  }
  func.func @transform_5(%arg0: i32) -> (i32, i32) {
    %c0_i32 = arith.constant 0 : i32
    %c0_i32_0 = arith.constant 0 : i32
    %c0_i32_1 = arith.constant 0 : i32
    return %c0_i32, %c0_i32_0 : i32, i32
  }
  func.func @transform_6(%arg0: i32) -> (i32, i32, i32) {
    %c0_i32 = arith.constant 0 : i32
    %c0_i32_0 = arith.constant 0 : i32
    %c0_i32_1 = arith.constant 0 : i32
    return %arg0, %c0_i32, %c0_i32_0 : i32, i32, i32
  }
}

</mosaic_0001>

<bundles_post_ra>
// kernel: tpu_custom_call.1
= control target key start
LH: loop header
LB: loop body
LE: loop exit
PB: predicated region body
PF: predicated region fallthrough
CT: control target
= control target key end

     0   :  { %11 = vsyncpa [#allocation3], 0  ;;  %s3378_s0 = inlined_call_operand.vmem [shape: f32[2,4,256], index: 0, kind: input, shape index: {}]   ;;  %s3379_s1 = inlined_call_operand.vmem [shape: f32[9,1,256], index: 1, kind: input, shape index: {}]   ;;  %s3380_s2 = inlined_call_operand.vmem [shape: f32[36,4,1], index: 2, kind: input, shape index: {}]   ;;  %s3381_s3 = inlined_call_operand.vmem [shape: f32[4,1], index: 3, kind: input, shape index: {}]   ;;  %s3382_s4 = inlined_call_operand.vmem [shape: f32[36,4,1], index: 4, kind: input, shape index: {}]   ;;  %s3383_s5 = inlined_call_operand.vmem [shape: f32[4,1], index: 5, kind: input, shape index: {}]   ;;  %s3384_s6 = inlined_call_operand.hbm [shape: f32[2,4,256], index: 6, kind: output, shape index: {}]  }
   0x1   :  { %13 = vsyncpa [#allocation3 + $0x1], 0  ;;  %s2246_s21 = smov 0   ;;  %s2248_s22 = smov 0  }
   0x2   :  { %s2250_s23 = smov 0   ;;  %s2252_s24 = smov 0  }
   0x3 LB: > { %s2267_s25 = sadd.s32 4294967295, %s2199_s24   ;;  %s1996_s26 = sadd.s32 4294967294, %s2199_s24   ;;  %s2199_s24 = sphi %s2252_s24, %s3463_s24   ;;  %s2195_s23 = sphi %s2250_s23, %s3462_s23   ;;  %s2191_s22 = sphi %s2248_s22, %s3461_s22   ;;  %s2187_s21 = sphi %s2246_s21, %s3460_s21  }
   0x4   : > { %s2271_s27 = sadd.s32 1, %s2199_s24   ;;  %s157_s28 = sadd.s32 1, %s2195_s23 }
   0x5   : > { %s154_s29 = ssub.s32 %s2199_s24, %s2271_s27  ;;  %p167_p0 = scmp.ne.s32.totalorder %s2195_s23, %s2191_s22 }
   0x6   : > { %p155_p1 = scmp.eq.s32.totalorder %s154_s29, 0  ;;  %p168_p2 = scmp.eq.s32.totalorder %s2267_s25, 1 }
   0x7   : > { %p173_p3 = scmp.ne.s32.totalorder %s2191_s22, %s2187_s21  ;;  %p174_p4 = scmp.eq.s32.totalorder %s1996_s26, 1 }
   0x8   : > { %s2282_s30 = scalar_select %p155_p1, %s2195_s23, %s157_s28  }
   0x9   : > { %p2284_p5 = por %p168_p2, %p167_p0  ;;  %p2288_p6 = por %p174_p4, %p173_p3 }
   0xa   : > { %p1999_p7 = scmp.ge.s32.totalorder %s2199_s24, 1  ;;  %p215_p8 = scmp.lt.s32.totalorder %s2199_s24, 3 }
   0xc   : > { %p216_p9 = pnand %p1999_p7, %p215_p8 }
   0xe   : > { %219 = sbr.rel (%p216_p9) target bundleno = 477 (0x1dd), region = 44 }
  0x13   : > { %v277_v0 = vld [vmem:[%s3380_s2] sm:$0xf]  ;;  %p245_p10 = scmp.lt.s32.totalorder %s2267_s25, 1  ;;  %v2201_v1 = vmov 0   ;;  %v2003_v2 = vld [vmem:[%s3380_s2 + $0x4] sm:$0xf] }
  0x14   : > { %2135 = vset.pattern.permute.xlu1 %v2201_v1  ;;  %2136 = vset.pattern.permute.xlu0 %v2201_v1  ;;  %s2202_s18 = smov 17   ;;  %v2005_v4 = vld [vmem:[%s3380_s2 + $0xc] sm:$0xf]  ;;  %v2004_v6 = vld [vmem:[%s3380_s2 + $0x8] sm:$0xf]  ;;  %s2203_s29 = smov 16  }
  0x15   : > { %288 = vperm.xlu1 %2135, %v277_v0   ;;  %s246_s11 = scalar_select %p245_p10, %s2267_s25, 1  ;;  %v2007_v7 = vld [vmem:[%s3380_s2 + $0x10] sm:$0xf]  ;;  %v2009_v8 = vld [vmem:[%s3380_s2 + $0x18] sm:$0xf] }
  0x16   : > { %v2008_v9 = vld [vmem:[%s3380_s2 + $0x14] sm:$0xf]  ;;  %v2010_v10 = vld [vmem:[%s3380_s2 + $0x1c] sm:$0xf]  ;;  %s2204_s19 = smov 15   ;;  %s3391_s10 = smov 127  }
  0x17   : > { %s2085_s14 = sshll.u32 %s246_s11, 3  ;;  %v2012_v11 = vld [vmem:[%s3380_s2 + $0x20] sm:$0xf]  ;;  %v2014_v12 = vld [vmem:[%s3380_s2 + $0x28] sm:$0xf]  ;;  %s3385_s9 = smov 113  }
  0x18   : > { %s2305_s17 = scalar_lea.vmem %s3378_s0, %s2085_s14  ;;  %v2013_v13 = vld [vmem:[%s3380_s2 + $0x24] sm:$0xf]  ;;  %v2015_v14 = vld [vmem:[%s3380_s2 + $0x2c] sm:$0xf]  ;;  %s2205_s14 = smov 1  }
  0x19   : > { %305 = vperm.xlu1 %2135, %v2003_v2   ;;  %v2308_v3 = vld [vmem:[%s2305_s17] sm:$0xff]  ;;  %v2017_v15 = vld [vmem:[%s3380_s2 + $0x30] sm:$0xf]  ;;  %v2019_v16 = vld [vmem:[%s3380_s2 + $0x38] sm:$0xf]  ;;  %s3387_s11 = smov 112  }
  0x1a   : > { %254 = vrot.lane.b32.xlu0 %v2308_v3, %s2202_s18  ;;  %v2317_v5 = vcombine.high %v2308_v3, %v2308_v3  ;;  %v2018_v17 = vld [vmem:[%s3380_s2 + $0x34] sm:$0xf]  ;;  %v2021_v18 = vld [vmem:[%s3380_s2 + $0x40] sm:$0xf]  ;;  %v2020_v19 = vld [vmem:[%s3380_s2 + $0x3c] sm:$0xf] }
  0x1b   : > { %v2023_v20 = vld [vmem:[%s3380_s2 + $0x48] sm:$0xf]  ;;  %v2022_v21 = vld [vmem:[%s3380_s2 + $0x44] sm:$0xf]  ;;  %v2024_v22 = vld [vmem:[%s3380_s2 + $0x4c] sm:$0xf] }
  0x1c   : > { %3410 = vst [vmem:[#allocation5_spill] sm:$0xff] %v2317_v5  ;;  %v2026_v23 = vld [vmem:[%s3380_s2 + $0x50] sm:$0xf]  ;;  %v2028_v24 = vld [vmem:[%s3380_s2 + $0x58] sm:$0xf]  ;;  %s3439_s12 = smov 113  }
  0x1d   : > { %339 = vperm.xlu1 %2135, %v2005_v4   ;;  %v2027_v25 = vld [vmem:[%s3380_s2 + $0x54] sm:$0xf]  ;;  %v2029_v26 = vld [vmem:[%s3380_s2 + $0x5c] sm:$0xf]  ;;  %v2031_v27 = vld [vmem:[%s3380_s2 + $0x60] sm:$0xf] }
  0x1e   : > { %256 = vrot.lane.b32.xlu0 %v2317_v5, %s2202_s18  ;;  %v2033_v28 = vld [vmem:[%s3380_s2 + $0x68] sm:$0xf]  ;;  %v2032_v29 = vld [vmem:[%s3380_s2 + $0x64] sm:$0xf]  ;;  %v2034_v30 = vld [vmem:[%s3380_s2 + $0x6c] sm:$0xf] }
  0x1f   : > { %v2036_v31 = vld [vmem:[%s3380_s2 + $0x70] sm:$0xf]  ;;  %v2038_v32 = vld [vmem:[%s3380_s2 + $0x78] sm:$0xf]  ;;  %v2037_v33 = vld [vmem:[%s3380_s2 + $0x74] sm:$0xf] }
  0x20   : > { %v2039_v34 = vld [vmem:[%s3380_s2 + $0x7c] sm:$0xf]  ;;  %v2041_v35 = vld [vmem:[%s3380_s2 + $0x80] sm:$0xf]  ;;  %v2043_v36 = vld [vmem:[%s3380_s2 + $0x88] sm:$0xf] }
  0x21   : > { %344 = vrot.lane.b32.xlu1 %v2308_v3, %s2203_s29  ;;  %v2042_v37 = vld [vmem:[%s3380_s2 + $0x84] sm:$0xf]  ;;  %v1152_v38 = vld [vmem:[%s3381_s3] sm:$0xf]  ;;  %v2044_v39 = vld [vmem:[%s3380_s2 + $0x8c] sm:$0xf] }
  0x22   : > { %322 = vperm.xlu0 %2136, %v2004_v6   ;;  %v2045_v40 = vld [vmem:[%s3382_s4 + $0x4] sm:$0xf]  ;;  %v1170_v41 = vld [vmem:[%s3382_s4] sm:$0xf]  ;;  %v2047_v42 = vld [vmem:[%s3382_s4 + $0xc] sm:$0xf] }
  0x23   : > { %v2046_v43 = vld [vmem:[%s3382_s4 + $0x8] sm:$0xf]  ;;  %v2049_v44 = vld [vmem:[%s3382_s4 + $0x14] sm:$0xf]  ;;  %v2048_v45 = vld [vmem:[%s3382_s4 + $0x10] sm:$0xf] }
  0x24   : > { %v2051_v46 = vld [vmem:[%s3382_s4 + $0x1c] sm:$0xf]  ;;  %v2050_v47 = vld [vmem:[%s3382_s4 + $0x18] sm:$0xf]  ;;  %v2053_v48 = vld [vmem:[%s3382_s4 + $0x24] sm:$0xf] }
  0x25   : > { %378 = vperm.xlu1 %2135, %v2007_v7   ;;  %v2052_v49 = vld [vmem:[%s3382_s4 + $0x20] sm:$0xf]  ;;  %v2055_v51 = vld [vmem:[%s3382_s4 + $0x2c] sm:$0xf]  ;;  %v2054_v53 = vld [vmem:[%s3382_s4 + $0x28] sm:$0xf] }
  0x26   : > { %346 = vrot.lane.b32.xlu0 %v2317_v5, %s2203_s29  ;;  %v2057_v55 = vld [vmem:[%s3382_s4 + $0x34] sm:$0xf]  ;;  %v2056_v56 = vld [vmem:[%s3382_s4 + $0x30] sm:$0xf]  ;;  %v2059_v59 = vld [vmem:[%s3382_s4 + $0x3c] sm:$0xf] }
  0x27   : > { %v2058_v60 = vld [vmem:[%s3382_s4 + $0x38] sm:$0xf]  ;;  %v2061_v63 = vld [vmem:[%s3382_s4 + $0x44] sm:$0xf]  ;;  %v2060_v0 = vld [vmem:[%s3382_s4 + $0x40] sm:$0xf] }
  0x28   : > { %s3440_s20 = smov 112   ;;  %s242_s13 = sand.u32 1, %s2191_s22  }
  0x29   : > { %416 = vperm.xlu1 %2135, %v2009_v8   ;;  %s2086_s15 = sshll.u32 %s2267_s25, 7  ;;  %s1923_s26 = scalar_lea.sflag [#allocation3], %s242_s13 }
  0x2a   : > { %397 = vperm.xlu0 %2136, %v2008_v9   ;;  %s2210_s25 = smov [#allocation2]  }
  0x2d   : > { %442 = vrot.lane.b32.xlu1 %v2308_v3, %s2204_s19 }
  0x2e   : > { %435 = vperm.xlu0 %2136, %v2010_v10   ;;  %v258_v10 = vlaneseq }
  0x31   : > { %476 = vperm.xlu1 %2135, %v2012_v11  }
  0x32   : > { %444 = vrot.lane.b32.xlu0 %v2317_v5, %s2204_s19 }
  0x35   : > { %514 = vperm.xlu1 %2135, %v2014_v12  }
  0x36   : > { %495 = vperm.xlu0 %2136, %v2013_v13   ;;  %v266_v13 = vshrl.u32 %v258_v10, 7 }
  0x39   : > { %540 = vrot.lane.b32.xlu1 %v2308_v3, %s2205_s14 }
  0x3a   : > { %533 = vperm.xlu0 %2136, %v2015_v14  }
  0x3d   : > { %574 = vperm.xlu1 %2135, %v2017_v15   ;;  %v2535_v15 = vand.u32 127, %v258_v10 }
  0x3e   : > { %542 = vrot.lane.b32.xlu0 %v2317_v5, %s2205_s14 }
  0x3f   : > { %vm260_vm0 = vcmp.lt.s32.totalorder %v2535_v15, 17  ;;  %vm348_vm1 = vcmp.lt.s32.totalorder %v2535_v15, 16  ;;  %vm446_vm2 = vcmp.lt.s32.totalorder %v2535_v15, 15  ;;  %vm544_vm3 = vcmp.lt.s32.totalorder %v2535_v15, 1 }
  0x40   : > { %vm758_vm4 = vcmp.lt.s32.totalorder %v2535_v15, 127  ;;  %vm856_vm5 = vcmp.lt.s32.totalorder %v2535_v15, 113  ;;  %vm954_vm6 = vcmp.lt.s32.totalorder %v2535_v15, 112  ;;  %vm1052_vm7 = vcmp.lt.s32.totalorder %v2535_v15, 111 }
  0x41   : > { %612 = vperm.xlu1 %2135, %v2019_v16  }
  0x42   : > { %593 = vperm.xlu0 %2136, %v2018_v17   ;;  %v2539_v17 = vsub.s32 0, %v266_v13 }
  0x45   : > { %660 = vperm.xlu1 %2135, %v2021_v18   ;;  %v2541_v18 = vsub.s32 1, %v266_v13 }
  0x46   : > { %631 = vperm.xlu0 %2136, %v2020_v19  }
  0x49   : > { %718 = vperm.xlu1 %2135, %v2023_v20   ;;  %v263_v20 = vld [vmem:[%s3379_s1] sm:$0x3] }
  0x4a   : > { %689 = vperm.xlu0 %2136, %v2022_v21   ;;  %v646_v21 = vsub.s32 4, %v266_v13 }
  0x4d   : > { %754 = vrot.lane.b32.xlu1 %v2308_v3, %s3391_s10 }
  0x4e   : > { %747 = vperm.xlu0 %2136, %v2024_v22   ;;  %v2006_v22 = vld [vmem:[%s3379_s1 + $0x2] sm:$0x3] }
  0x51   : > { %788 = vperm.xlu1 %2135, %v2026_v23   ;;  %v704_v23 = vsub.s32 6, %v266_v13 }
  0x52   : > { %756 = vrot.lane.b32.xlu0 %v2317_v5, %s3391_s10 }
  0x55   : > { %826 = vperm.xlu1 %2135, %v2028_v24   ;;  %v2552_v24 = vsub.s32 3, %v266_v13 }
  0x56   : > { %807 = vperm.xlu0 %2136, %v2027_v25  }
  0x59   : > { %852 = vrot.lane.b32.xlu1 %v2308_v3, %s3385_s9 }
  0x5a   : > { %845 = vperm.xlu0 %2136, %v2029_v26   ;;  %v675_v26 = vsub.s32 5, %v266_v13 }
  0x5d   : > { %886 = vperm.xlu1 %2135, %v2031_v27   ;;  %v2557_v27 = vrot.slane %v263_v20, %v2539_v17 }
  0x5e   : > { %854 = vrot.lane.b32.xlu0 %v2317_v5, %s3385_s9  ;;  %s3389_s9 = smov 111  }
  0x5f   : > { %3411 = vst [vmem:[#allocation6_spill] sm:$0xff] %v2557_v27 }
  0x61   : > { %924 = vperm.xlu1 %2135, %v2033_v28   ;;  %v2560_v28 = vrot.slane %v263_v20, %v2541_v18 }
  0x62   : > { %905 = vperm.xlu0 %2136, %v2032_v29   ;;  %v2562_v29 = vsub.s32 2, %v266_v13 }
  0x63   : > { %3412 = vst [vmem:[#allocation7_spill] sm:$0xff] %v2560_v28 }
  0x65   : > { %950 = vrot.lane.b32.xlu1 %v2308_v3, %s3387_s11 }
  0x66   : > { %943 = vperm.xlu0 %2136, %v2034_v30  }
  0x69   : > { %984 = vperm.xlu1 %2135, %v2036_v31   ;;  %v733_v31 = vsub.s32 7, %v266_v13 }
  0x6a   : > { %952 = vrot.lane.b32.xlu0 %v2317_v5, %s3387_s11  ;;  %s2143_s11 = sshll.u32 %s2210_s25, 4  ;;  %s2144_s11 = int_to_ptr.vmem [resolvable:$false] %s2143_s11 }
  0x6d   : > { %1022 = vperm.xlu1 %2135, %v2038_v32   ;;  %v2568_v32 = vrot.slane %v2006_v22, %v2539_v17 }
  0x6e   : > { %1003 = vperm.xlu0 %2136, %v2037_v33   ;;  %v2011_v33 = vld [vmem:[%s3379_s1 + $0x4] sm:$0x3] }
  0x6f   : > { %3413 = vst [vmem:[#allocation8_spill] sm:$0xff] %v2568_v32 }
  0x71   : > { %1048 = vrot.lane.b32.xlu1 %v2308_v3, %s3389_s9 }
  0x72   : > { %1041 = vperm.xlu0 %2136, %v2039_v34   ;;  %v643_v34 = vrot.slane %v2308_v3, %v2539_v17 }
  0x75   : > { %1082 = vperm.xlu1 %2135, %v2041_v35   ;;  %v2576_v35 = vrot.slane %v2308_v3, %v646_v21 }
  0x76   : > { %1050 = vrot.lane.b32.xlu0 %v2317_v5, %s3389_s9 }
  0x79   : > { %1120 = vperm.xlu1 %2135, %v2043_v36  }
  0x7a   : > { %1101 = vperm.xlu0 %2136, %v2042_v37  }
  0x7d   : > { %1155 = vperm.xlu1 %2135, %v1152_v38   ;;  %v2016_v38 = vld [vmem:[%s3379_s1 + $0x6] sm:$0x3] }
  0x7e   : > { %1139 = vperm.xlu0 %2136, %v2044_v39   ;;  %v701_v39 = vrot.slane %v2308_v3, %v2562_v29 }
  0x81   : > { %1198 = vperm.xlu1 %2135, %v2045_v40   ;;  %v2588_v40 = vrot.slane %v2308_v3, %v704_v23 }
  0x82   : > { %1181 = vperm.xlu0 %2136, %v1170_v41   ;;  %v2591_v41 = vrot.slane %v2006_v22, %v2541_v18  ;;  %v2035_v22 = vld [vmem:[%s3379_s1 + $0xe] sm:$0x3] }
  0x84   : > { %3414 = vst [vmem:[#allocation9_spill] sm:$0xff] %v2591_v41 }
  0x85   : > { %1232 = vperm.xlu1 %2135, %v2047_v42  }
  0x86   : > { %1215 = vperm.xlu0 %2136, %v2046_v43   ;;  %v672_v43 = vrot.slane %v2308_v3, %v2541_v18 }
  0x88   : > { %v2654_v20 = vrot.slane %v672_v43, %v2541_v18 }
  0x89   : > { %1276 = vperm.xlu1 %2135, %v2049_v44   ;;  %v2599_v44 = vrot.slane %v2308_v3, %v675_v26 }
  0x8a   : > { %1257 = vperm.xlu0 %2136, %v2048_v45   ;;  %v2602_v45 = vrot.slane %v2011_v33, %v2539_v17 }
  0x8c   : > { %v255_v52 = vpop.permute.xlu0 %254  ;;  %3415 = vst [vmem:[#allocation10_spill] sm:$0xff] %v2602_v45 }
  0x8d   : > { %1314 = vperm.xlu1 %2135, %v2051_v46   ;;  %v2605_v46 = vrot.slane %v2011_v33, %v2541_v18  ;;  %v2040_v33 = vld [vmem:[%s3379_s1 + $0x10] sm:$0x3] }
  0x8e   : > { %1295 = vperm.xlu0 %2136, %v2050_v47  }
  0x8f   : > { %3416 = vst [vmem:[#allocation11_spill] sm:$0xff] %v2605_v46 }
  0x90   : > { %v2481_v50 = vpop.permute.xlu1 %288  ;;  %v257_v58 = vpop.permute.xlu0 %256 }
  0x91   : > { %1360 = vperm.xlu1 %2135, %v2053_v48   ;;  %v261_v36 = vsel %vm260_vm0, %v255_v52, %v257_v58  ;;  %v262_v37 = vsel %vm260_vm0, %v257_v58, %v255_v52  ;;  %v730_v48 = vrot.slane %v2308_v3, %v2552_v24 }
  0x92   : > { %1341 = vperm.xlu0 %2136, %v2052_v49   ;;  %v2612_v49 = vrot.slane %v2308_v3, %v733_v31  ;;  %v2618_v52 = vmul.f32 %v2560_v28, %v261_v36  ;;  %v2631_v3 = vrot.slane %v643_v34, %v2539_v17 }
  0x93   : > { %v2664_v26 = vrot.slane %v730_v48, %v2552_v24  ;;  %v2690_v48 = vrot.slane %v2035_v22, %v2539_v17 }
  0x94   : > { %v2489_v54 = vpop.permute.xlu1 %305  ;;  %3417 = vst [vmem:[#allocation12_spill] sm:$0xff] %v2612_v49  ;;  %v302_v36 = vrot.slane %v2618_v52, %v2541_v18  ;;  %v285_v21 = vrot.slane %v2618_v52, %v2539_v17  ;;  %v319_v5 = vrot.slane %v2618_v52, %v2562_v29 }
  0x95   : > { %1398 = vperm.xlu1 %2135, %v2055_v51   ;;  %v2615_v51 = vmul.f32 %v2557_v27, %v262_v37  ;;  %3419 = vst [vmem:[#allocation14_spill] sm:$0xff] %v2664_v26  ;;  %3422 = vst [vmem:[#allocation17_spill] sm:$0xff] %v2690_v48 }
  0x96   : > { %1379 = vperm.xlu0 %2136, %v2054_v53   ;;  %v2622_v53 = vrot.slane %v2016_v38, %v2539_v17 }
  0x97   : > { %v298_v34 = vrot.slane %v2615_v51, %v2541_v18  ;;  %v315_v58 = vrot.slane %v2615_v51, %v2562_v29 }
  0x98   : > { %v2497_v57 = vpop.permute.xlu1 %339 }
  0x99   : > { %1444 = vperm.xlu1 %2135, %v2057_v55   ;;  %v2625_v55 = vrot.slane %v2016_v38, %v2541_v18  ;;  %v308_v27 = vmul.f32 %v2489_v54, %v298_v34 }
  0x9a   : > { %1425 = vperm.xlu0 %2136, %v2056_v56   ;;  %v2025_v56 = vld [vmem:[%s3379_s1 + $0xa] sm:$0x3] }
  0x9b   : > { %3418 = vst [vmem:[#allocation13_spill] sm:$0xff] %v2625_v55  ;;  %v2672_v31 = vrot.slane %v2025_v56, %v2541_v18 }
  0x9c   : > { %v2505_v61 = vpop.permute.xlu1 %344 }
  0x9d   : > { %1482 = vperm.xlu1 %2135, %v2059_v59   ;;  %v2507_v62 = vpop.permute.xlu0 %322  ;;  %v2636_v59 = vrot.slane %v701_v39, %v2562_v29 }
  0x9e   : > { %1463 = vperm.xlu0 %2136, %v2058_v60  }
  0xa0   : > { %v2515_v1 = vpop.permute.xlu1 %378 }
  0xa1   : > { %1520 = vperm.xlu1 %2135, %v2061_v63   ;;  %v2517_v2 = vpop.permute.xlu0 %346  ;;  %v2030_v63 = vld [vmem:[%s3379_s1 + $0xc] sm:$0x3] }
  0xa2   : > { %1501 = vperm.xlu0 %2136, %v2060_v0   ;;  %v349_v0 = vsel %vm348_vm1, %v2505_v61, %v2517_v2  ;;  %v350_v10 = vsel %vm348_vm1, %v2517_v2, %v2505_v61  ;;  %v2669_v2 = vrot.slane %v2025_v56, %v2539_v17  ;;  %v2682_v37 = vrot.slane %v2030_v63, %v2539_v17 }
  0xa3   : > { %v2685_v38 = vrot.slane %v2030_v63, %v2541_v18  ;;  %v364_v39 = vmul.f32 %v2568_v32, %v350_v10  ;;  %v365_v43 = vmul.f32 %v2591_v41, %v349_v0  ;;  %v2693_v56 = vrot.slane %v2035_v22, %v2541_v18 }
  0xa4   : > { %v2519_v4 = vpop.permute.xlu1 %416  ;;  %3420 = vst [vmem:[#allocation15_spill] sm:$0xff] %v2682_v37  ;;  %v281_v61 = vrot.slane %v2615_v51, %v2539_v17  ;;  %v2702_v63 = vrot.slane %v2040_v33, %v2539_v17  ;;  %v2705_v10 = vrot.slane %v2040_v33, %v2541_v18  ;;  %v332_v0 = vrot.slane %v2615_v51, %v2552_v24 }
  0xa5   : > { %v2521_v6 = vpop.permute.xlu0 %397  ;;  %3421 = vst [vmem:[#allocation16_spill] sm:$0xff] %v2685_v38  ;;  %3423 = vst [vmem:[#allocation18_spill] sm:$0xff] %v2693_v56  ;;  %v336_v22 = vrot.slane %v2618_v52, %v2552_v24  ;;  %v309_v41 = vmul.f32 %v2489_v54, %v302_v36  ;;  %v371_v51 = vrot.slane %v364_v39, %v2539_v17 }
  0xa6   : > { %3424 = vst [vmem:[#allocation19_spill] sm:$0xff] %v2702_v63  ;;  %3425 = vst [vmem:[#allocation20_spill] sm:$0xff] %v2705_v10  ;;  %v375_v52 = vrot.slane %v365_v43, %v2539_v17  ;;  %v409_v10 = vrot.slane %v364_v39, %v2562_v29  ;;  %v413_v34 = vrot.slane %v365_v43, %v2562_v29 }
  0xa7   : > { %v390_v54 = vrot.slane %v364_v39, %v2541_v18  ;;  %v394_v36 = vrot.slane %v365_v43, %v2541_v18  ;;  %v291_v63 = vmul.f32 %v2481_v50, %v281_v61  ;;  %v292_v56 = vmul.f32 %v2481_v50, %v285_v21 }
  0xa8   : > { %v2523_v7 = vpop.permute.xlu1 %442  ;;  %v342_v50 = vmul.f32 %v2497_v57, %v332_v0  ;;  %v428_v21 = vrot.slane %v364_v39, %v2552_v24  ;;  %v381_v49 = vmul.f32 %v2515_v1, %v371_v51  ;;  %v382_v26 = vmul.f32 %v2515_v1, %v375_v52 }
  0xa9   : > { %v2525_v8 = vpop.permute.xlu0 %435 }
  0xac   : > { %v2527_v9 = vpop.permute.xlu1 %476 }
  0xad   : > { %v2529_v11 = vpop.permute.xlu0 %444 }
  0xae   : > { %v447_v33 = vsel %vm446_vm2, %v2523_v7, %v2529_v11  ;;  %v448_v32 = vsel %vm446_vm2, %v2529_v11, %v2523_v7 }
  0xaf   : > { %v2738_v7 = vmul.f32 %v2602_v45, %v448_v32  ;;  %v2741_v11 = vmul.f32 %v2605_v46, %v447_v33  ;;  %v343_v32 = vmul.f32 %v2497_v57, %v336_v22  ;;  %v432_v33 = vrot.slane %v365_v43, %v2552_v24 }
  0xb0   : > { %v2531_v12 = vpop.permute.xlu1 %514  ;;  %v419_v46 = vmul.f32 %v2519_v4, %v409_v10  ;;  %v420_v45 = vmul.f32 %v2519_v4, %v413_v34  ;;  %v325_v4 = vmul.f32 %v2507_v62, %v315_v58  ;;  %v326_v10 = vmul.f32 %v2507_v62, %v319_v5 }
  0xb1   : > { %v2533_v14 = vpop.permute.xlu0 %495  ;;  %v507_v1 = vrot.slane %v2738_v7, %v2562_v29  ;;  %v511_v0 = vrot.slane %v2741_v11, %v2562_v29  ;;  %v439_v51 = vmul.f32 %v2525_v8, %v432_v33  ;;  %v473_v52 = vrot.slane %v2741_v11, %v2539_v17 }
  0xb2   : > { %v421_v58 = vadd.f32 %v419_v46, %v325_v4  ;;  %v422_v34 = vadd.f32 %v420_v45, %v326_v10  ;;  %v383_v5 = vadd.f32 %v381_v49, %v291_v63  ;;  %v384_v62 = vadd.f32 %v382_v26, %v292_v56 }
  0xb3   : > { %v518_v33 = vmul.f32 %v2531_v12, %v511_v0  ;;  %v488_v46 = vrot.slane %v2738_v7, %v2541_v18  ;;  %v492_v45 = vrot.slane %v2741_v11, %v2541_v18  ;;  %v441_v49 = vadd.f32 %v439_v51, %v343_v32 }
  0xb4   : > { %v2537_v16 = vpop.permute.xlu1 %540  ;;  %v480_v56 = vmul.f32 %v2527_v9, %v473_v52  ;;  %v526_v63 = vrot.slane %v2738_v7, %v2552_v24 }
  0xb5   : > { %v2543_v19 = vpop.permute.xlu0 %533  ;;  %v520_v10 = vadd.f32 %v518_v33, %v422_v34  ;;  %v499_v0 = vmul.f32 %v2533_v14, %v492_v45 }
  0xb8   : > { %v2554_v25 = vpop.permute.xlu1 %574 }
  0xb9   : > { %v2564_v30 = vpop.permute.xlu0 %542 }
  0xba   : > { %v545_v38 = vsel %vm544_vm3, %v2537_v16, %v2564_v30  ;;  %v546_v61 = vsel %vm544_vm3, %v2564_v30, %v2537_v16  ;;  %v400_v16 = vmul.f32 %v2521_v6, %v390_v54  ;;  %v401_v30 = vmul.f32 %v2521_v6, %v394_v36 }
  0xbb   : > { %v2765_v57 = vmul.f32 %v2622_v53, %v546_v61  ;;  %v2768_v39 = vmul.f32 %v2625_v55, %v545_v38  ;;  %v438_v6 = vmul.f32 %v2525_v8, %v428_v21  ;;  %v469_v38 = vrot.slane %v2738_v7, %v2539_v17 }
  0xbc   : > { %v2594_v42 = vpop.permute.xlu1 %612  ;;  %v402_v54 = vadd.f32 %v400_v16, %v308_v27  ;;  %v403_v36 = vadd.f32 %v401_v30, %v309_v41  ;;  %v517_v8 = vmul.f32 %v2531_v12, %v507_v1  ;;  %v530_v12 = vrot.slane %v2741_v11, %v2552_v24 }
  0xbd   : > { %v2607_v47 = vpop.permute.xlu0 %593  ;;  %v567_v61 = vrot.slane %v2765_v57, %v2539_v17  ;;  %v571_v21 = vrot.slane %v2768_v39, %v2539_v17  ;;  %v440_v41 = vadd.f32 %v438_v6, %v342_v50  ;;  %v479_v26 = vmul.f32 %v2527_v9, %v469_v38 }
  0xbe   : > { %v605_v16 = vrot.slane %v2765_v57, %v2562_v29  ;;  %v609_v30 = vrot.slane %v2768_v39, %v2562_v29  ;;  %v586_v50 = vrot.slane %v2765_v57, %v2541_v18  ;;  %v590_v32 = vrot.slane %v2768_v39, %v2541_v18 }
  0xbf   : > { %v577_v9 = vmul.f32 %v2554_v25, %v567_v61  ;;  %v578_v4 = vmul.f32 %v2554_v25, %v571_v21  ;;  %v519_v11 = vadd.f32 %v517_v8, %v421_v58  ;;  %v498_v1 = vmul.f32 %v2533_v14, %v488_v46 }
  0xc0   : > { %v2651_v13 = vpop.permute.xlu1 %660  ;;  %v481_v51 = vadd.f32 %v479_v26, %v383_v5  ;;  %v482_v38 = vadd.f32 %v480_v56, %v384_v62  ;;  %v536_v61 = vmul.f32 %v2543_v19, %v526_v63  ;;  %v537_v58 = vmul.f32 %v2543_v19, %v530_v12 }
  0xc1   : > { %v2661_v23 = vpop.permute.xlu0 %631  ;;  %v615_v34 = vmul.f32 %v2594_v42, %v605_v16  ;;  %v616_v14 = vmul.f32 %v2594_v42, %v609_v30  ;;  %v596_v21 = vmul.f32 %v2607_v47, %v586_v50  ;;  %v597_v5 = vmul.f32 %v2607_v47, %v590_v32 }
  0xc2   : > { %v579_v62 = vadd.f32 %v577_v9, %v481_v51  ;;  %v580_v8 = vadd.f32 %v578_v4, %v482_v38  ;;  %v663_v46 = vmul.f32 %v2651_v13, %v2631_v3  ;;  %v500_v47 = vadd.f32 %v498_v1, %v402_v54  ;;  %v3430_v38 = vld [vmem:[#allocation12_spill] sm:$0xff] }
  0xc3   : > { %v501_v26 = vadd.f32 %v499_v0, %v403_v36  ;;  %v624_v56 = vrot.slane %v2765_v57, %v2552_v24  ;;  %v628_v3 = vrot.slane %v2768_v39, %v2552_v24  ;;  %v538_v63 = vadd.f32 %v536_v61, %v440_v41  ;;  %v3429_v0 = vld [vmem:[#allocation14_spill] sm:$0xff] }
  0xc4   : > { %v2699_v60 = vpop.permute.xlu1 %718  ;;  %v539_v12 = vadd.f32 %v537_v58, %v441_v49  ;;  %v618_v16 = vadd.f32 %v616_v14, %v520_v10  ;;  %v665_v36 = vadd.f32 %v663_v46, %v579_v62  ;;  %v3427_v4 = vrot.slane %v2588_v40, %v2562_v29  ;;  %v3432_v62 = vld [vmem:[#allocation15_spill] sm:$0xff]  ;;  %v3433_v46 = vld [vmem:[#allocation16_spill] sm:$0xff] }
  0xc5   : > { %v2715_v28 = vpop.permute.xlu0 %689  ;;  %v599_v30 = vadd.f32 %v597_v5, %v501_v26  ;;  %v634_v50 = vmul.f32 %v2661_v23, %v624_v56  ;;  %v635_v32 = vmul.f32 %v2661_v23, %v628_v3  ;;  %v721_v49 = vmul.f32 %v2699_v60, %v2636_v59 }
  0xc6   : > { %v692_v23 = vmul.f32 %v2715_v28, %v2654_v20  ;;  %v3428_v10 = vrot.slane %v2599_v44, %v2541_v18 }
  0xc7   : > { %v636_v20 = vadd.f32 %v634_v50, %v538_v63 }
  0xc8   : > { %v2735_v48 = vpop.permute.xlu1 %754  ;;  %v693_v1 = vmul.f32 %v2715_v28, %v3428_v10 }
  0xc9   : > { %v2751_v37 = vpop.permute.xlu0 %747 }
  0xca   : > { %v750_v51 = vmul.f32 %v2751_v37, %v3429_v0 }
  0xcc   : > { %v2770_v43 = vpop.permute.xlu1 %788 }
  0xcd   : > { %v757_v22 = vpop.permute.xlu0 %756 }
  0xce   : > { %v759_v52 = vsel %vm758_vm4, %v2735_v48, %v757_v22  ;;  %v760_v25 = vsel %vm758_vm4, %v757_v22, %v2735_v48  ;;  %v3426_v48 = vrot.slane %v2576_v35, %v2539_v17  ;;  %v617_v35 = vadd.f32 %v615_v34, %v519_v11 }
  0xcf   : > { %v2840_v22 = vmul.f32 %v2669_v2, %v759_v52  ;;  %v2843_v42 = vmul.f32 %v2672_v31, %v760_v25  ;;  %v722_v11 = vmul.f32 %v2699_v60, %v3427_v4  ;;  %v3431_v52 = vrot.slane %v3430_v38, %v2552_v24 }
  0xd0   : > { %v2788_v55 = vpop.permute.xlu1 %826  ;;  %v664_v19 = vmul.f32 %v2651_v13, %v3426_v48  ;;  %v598_v13 = vadd.f32 %v596_v21, %v500_v47  ;;  %v637_v25 = vadd.f32 %v635_v32, %v539_v12  ;;  %v723_v21 = vadd.f32 %v721_v49, %v617_v35  ;;  %v3434_v49 = vld [vmem:[#allocation17_spill] sm:$0xff] }
  0xd1   : > { %v2796_v27 = vpop.permute.xlu0 %807  ;;  %v819_v57 = vrot.slane %v2840_v22, %v2562_v29  ;;  %v823_v39 = vrot.slane %v2843_v42, %v2562_v29  ;;  %v751_v59 = vmul.f32 %v2751_v37, %v3431_v52  ;;  %v781_v44 = vrot.slane %v2840_v22, %v2539_v17 }
  0xd2   : > { %v666_v9 = vadd.f32 %v664_v19, %v580_v8  ;;  %v785_v28 = vrot.slane %v2843_v42, %v2539_v17  ;;  %v800_v37 = vrot.slane %v2840_v22, %v2541_v18  ;;  %v804_v14 = vrot.slane %v2843_v42, %v2541_v18 }
  0xd3   : > { %v829_v58 = vmul.f32 %v2788_v55, %v819_v57  ;;  %v830_v34 = vmul.f32 %v2788_v55, %v823_v39  ;;  %v724_v5 = vadd.f32 %v722_v11, %v618_v16  ;;  %v694_v19 = vadd.f32 %v692_v23, %v598_v13  ;;  %v3435_v11 = vld [vmem:[#allocation18_spill] sm:$0xff] }
  0xd4   : > { %v853_v7 = vpop.permute.xlu1 %852  ;;  %v752_v47 = vadd.f32 %v750_v51, %v636_v20  ;;  %v753_v26 = vadd.f32 %v751_v59, %v637_v25  ;;  %v791_v56 = vmul.f32 %v2770_v43, %v781_v44  ;;  %v792_v55 = vmul.f32 %v2770_v43, %v785_v28 }
  0xd5   : > { %v2817_v6 = vpop.permute.xlu0 %845  ;;  %v838_v3 = vrot.slane %v2840_v22, %v2552_v24  ;;  %v842_v63 = vrot.slane %v2843_v42, %v2552_v24  ;;  %v831_v35 = vadd.f32 %v829_v58, %v723_v21  ;;  %v832_v16 = vadd.f32 %v830_v34, %v724_v5 }
  0xd6   : > { %v810_v50 = vmul.f32 %v2796_v27, %v800_v37  ;;  %v811_v13 = vmul.f32 %v2796_v27, %v804_v14  ;;  %v793_v0 = vadd.f32 %v791_v56, %v665_v36  ;;  %v794_v51 = vadd.f32 %v792_v55, %v666_v9 }
  0xd7   : > { %v848_v59 = vmul.f32 %v2817_v6, %v838_v3 }
  0xd8   : > { %v2831_v33 = vpop.permute.xlu1 %886  ;;  %v812_v38 = vadd.f32 %v810_v50, %v694_v19 }
  0xd9   : > { %v855_v45 = vpop.permute.xlu0 %854  ;;  %v850_v21 = vadd.f32 %v848_v59, %v752_v47 }
  0xda   : > { %v857_v40 = vsel %vm856_vm5, %v853_v7, %v855_v45  ;;  %v858_v60 = vsel %vm856_vm5, %v855_v45, %v853_v7  ;;  %v695_v45 = vadd.f32 %v693_v1, %v599_v30 }
  0xdb   : > { %v872_v8 = vmul.f32 %v3432_v62, %v857_v40  ;;  %v873_v48 = vmul.f32 %v3433_v46, %v858_v60  ;;  %v849_v40 = vmul.f32 %v2817_v6, %v842_v63 }
  0xdc   : > { %v925_v54 = vpop.permute.xlu1 %924  ;;  %v813_v52 = vadd.f32 %v811_v13, %v695_v45 }
  0xdd   : > { %v2856_v41 = vpop.permute.xlu0 %905  ;;  %v917_v32 = vrot.slane %v872_v8, %v2562_v29  ;;  %v921_v57 = vrot.slane %v873_v48, %v2562_v29  ;;  %v879_v42 = vrot.slane %v872_v8, %v2539_v17  ;;  %v883_v39 = vrot.slane %v873_v48, %v2539_v17 }
  0xde   : > { %v898_v27 = vrot.slane %v872_v8, %v2541_v18  ;;  %v902_v10 = vrot.slane %v873_v48, %v2541_v18  ;;  %v936_v44 = vrot.slane %v872_v8, %v2552_v24  ;;  %v940_v28 = vrot.slane %v873_v48, %v2552_v24 }
  0xdf   : > { %v927_v20 = vmul.f32 %v925_v54, %v917_v32  ;;  %v928_v25 = vmul.f32 %v925_v54, %v921_v57  ;;  %v890_v58 = vmul.f32 %v2831_v33, %v883_v39  ;;  %v851_v5 = vadd.f32 %v849_v40, %v753_v26 }
  0xe0   : > { %v951_v61 = vpop.permute.xlu1 %950  ;;  %v908_v34 = vmul.f32 %v2856_v41, %v898_v27  ;;  %v909_v37 = vmul.f32 %v2856_v41, %v902_v10 }
  0xe1   : > { %v944_v7 = vpop.permute.xlu0 %943  ;;  %v929_v45 = vadd.f32 %v927_v20, %v831_v35  ;;  %v892_v41 = vadd.f32 %v890_v58, %v794_v51 }
  0xe2   : > { %v946_v8 = vmul.f32 %v944_v7, %v936_v44  ;;  %v947_v48 = vmul.f32 %v944_v7, %v940_v28  ;;  %v910_v13 = vadd.f32 %v908_v34, %v812_v38 }
  0xe4   : > { %v985_v12 = vpop.permute.xlu1 %984  ;;  %v948_v47 = vadd.f32 %v946_v8, %v850_v21  ;;  %v949_v26 = vadd.f32 %v947_v48, %v851_v5 }
  0xe5   : > { %v953_v30 = vpop.permute.xlu0 %952 }
  0xe6   : > { %v955_v43 = vsel %vm954_vm6, %v951_v61, %v953_v30  ;;  %v956_v22 = vsel %vm954_vm6, %v953_v30, %v951_v61  ;;  %v889_v61 = vmul.f32 %v2831_v33, %v879_v42  ;;  %v930_v33 = vadd.f32 %v928_v25, %v832_v16 }
  0xe7   : > { %v970_v4 = vmul.f32 %v3434_v49, %v955_v43  ;;  %v971_v23 = vmul.f32 %v3435_v11, %v956_v22  ;;  %v911_v30 = vadd.f32 %v909_v37, %v813_v52 }
  0xe8   : > { %v1023_v1 = vpop.permute.xlu1 %1022  ;;  %v891_v50 = vadd.f32 %v889_v61, %v793_v0  ;;  %v3436_v0 = vld [vmem:[#allocation19_spill] sm:$0xff] }
  0xe9   : > { %v1004_v60 = vpop.permute.xlu0 %1003  ;;  %v1015_v36 = vrot.slane %v970_v4, %v2562_v29  ;;  %v1019_v9 = vrot.slane %v971_v23, %v2562_v29  ;;  %v977_v6 = vrot.slane %v970_v4, %v2539_v17  ;;  %v981_v54 = vrot.slane %v971_v23, %v2539_v17 }
  0xea   : > { %v996_v56 = vrot.slane %v970_v4, %v2541_v18  ;;  %v1000_v55 = vrot.slane %v971_v23, %v2541_v18  ;;  %v1034_v7 = vrot.slane %v970_v4, %v2552_v24  ;;  %v1038_v35 = vrot.slane %v971_v23, %v2552_v24 }
  0xeb   : > { %v1025_v3 = vmul.f32 %v1023_v1, %v1015_v36  ;;  %v1026_v63 = vmul.f32 %v1023_v1, %v1019_v9  ;;  %v987_v57 = vmul.f32 %v985_v12, %v977_v6  ;;  %v988_v43 = vmul.f32 %v985_v12, %v981_v54  ;;  %v3437_v12 = vld [vmem:[#allocation20_spill] sm:$0xff] }
  0xec   : > { %v1049_v14 = vpop.permute.xlu1 %1048  ;;  %v1006_v22 = vmul.f32 %v1004_v60, %v996_v56  ;;  %v1007_v42 = vmul.f32 %v1004_v60, %v1000_v55 }
  0xed   : > { %v1042_v19 = vpop.permute.xlu0 %1041  ;;  %v1027_v10 = vadd.f32 %v1025_v3, %v929_v45  ;;  %v1028_v1 = vadd.f32 %v1026_v63, %v930_v33  ;;  %v989_v4 = vadd.f32 %v987_v57, %v891_v50  ;;  %v990_v40 = vadd.f32 %v988_v43, %v892_v41 }
  0xee   : > { %v1044_v52 = vmul.f32 %v1042_v19, %v1034_v7  ;;  %v1045_v59 = vmul.f32 %v1042_v19, %v1038_v35  ;;  %v1008_v28 = vadd.f32 %v1006_v22, %v910_v13  ;;  %v1009_v61 = vadd.f32 %v1007_v42, %v911_v30 }
  0xf0   : > { %v1083_v32 = vpop.permute.xlu1 %1082  ;;  %v1046_v48 = vadd.f32 %v1044_v52, %v948_v47  ;;  %v1047_v19 = vadd.f32 %v1045_v59, %v949_v26  ;;  %v2066_v52 = vld [vmem:[%s3382_s4 + $0x58] sm:$0xf]  ;;  %v2068_v59 = vld [vmem:[%s3382_s4 + $0x60] sm:$0xf] }
  0xf1   : > { %v1051_v16 = vpop.permute.xlu0 %1050 }
  0xf2   : > { %v1053_v39 = vsel %vm1052_vm7, %v1049_v14, %v1051_v16  ;;  %v1054_v27 = vsel %vm1052_vm7, %v1051_v16, %v1049_v14 }
  0xf3   : > { %v1068_v51 = vmul.f32 %v3436_v0, %v1053_v39  ;;  %v1069_v38 = vmul.f32 %v3437_v12, %v1054_v27 }
  0xf4   : > { %v1121_v58 = vpop.permute.xlu1 %1120 }
  0xf5   : > { %v1075_v23 = vrot.slane %v1068_v51, %v2539_v17  ;;  %v1079_v60 = vrot.slane %v1069_v38, %v2539_v17  ;;  %v1113_v20 = vrot.slane %v1068_v51, %v2562_v29  ;;  %v1117_v25 = vrot.slane %v1069_v38, %v2562_v29  ;;  %v1102_v44 = vpop.permute.xlu0 %1101 }
  0xf6   : > { %v1094_v36 = vrot.slane %v1068_v51, %v2541_v18  ;;  %v1098_v9 = vrot.slane %v1069_v38, %v2541_v18  ;;  %v1132_v5 = vrot.slane %v1068_v51, %v2552_v24  ;;  %v1136_v8 = vrot.slane %v1069_v38, %v2552_v24  ;;  %v2065_v51 = vld [vmem:[%s3382_s4 + $0x54] sm:$0xf]  ;;  %v2064_v38 = vld [vmem:[%s3382_s4 + $0x50] sm:$0xf] }
  0xf7   : > { %v1123_v34 = vmul.f32 %v1121_v58, %v1113_v20  ;;  %v1124_v37 = vmul.f32 %v1121_v58, %v1117_v25  ;;  %v1085_v6 = vmul.f32 %v1083_v32, %v1075_v23  ;;  %v1086_v54 = vmul.f32 %v1083_v32, %v1079_v60  ;;  %v2070_v23 = vld [vmem:[%s3382_s4 + $0x68] sm:$0xf]  ;;  %v2072_v60 = vld [vmem:[%s3382_s4 + $0x70] sm:$0xf]  ;;  %v2071_v20 = vld [vmem:[%s3382_s4 + $0x6c] sm:$0xf] }
  0xf8   : > { %v1104_v14 = vmul.f32 %v1102_v44, %v1094_v36  ;;  %v1105_v21 = vmul.f32 %v1102_v44, %v1098_v9  ;;  %v1156_v42 = vpop.permute.xlu1 %1155  ;;  %v2073_v25 = vld [vmem:[%s3382_s4 + $0x74] sm:$0xf]  ;;  %v2074_v44 = vld [vmem:[%s3382_s4 + $0x78] sm:$0xf]  ;;  %v2077_v58 = vld [vmem:[%s3382_s4 + $0x84] sm:$0xf] }
  0xf9   : > { %v1087_v45 = vadd.f32 %v1085_v6, %v989_v4  ;;  %v1088_v33 = vadd.f32 %v1086_v54, %v990_v40  ;;  %v1140_v56 = vpop.permute.xlu0 %1139  ;;  %v1125_v41 = vadd.f32 %v1123_v34, %v1027_v10  ;;  %v1126_v13 = vadd.f32 %v1124_v37, %v1028_v1  ;;  %v2063_v10 = vld [vmem:[%s3382_s4 + $0x4c] sm:$0xf]  ;;  %v2062_v1 = vld [vmem:[%s3382_s4 + $0x48] sm:$0xf]  ;;  %v2067_v4 = vld [vmem:[%s3382_s4 + $0x5c] sm:$0xf] }
  0xfa   : > { %v1106_v55 = vadd.f32 %v1104_v14, %v1008_v28  ;;  %v1107_v3 = vadd.f32 %v1105_v21, %v1009_v61  ;;  %v1142_v63 = vmul.f32 %v1140_v56, %v1132_v5  ;;  %v1143_v50 = vmul.f32 %v1140_v56, %v1136_v8  ;;  %v2069_v40 = vld [vmem:[%s3382_s4 + $0x64] sm:$0xf]  ;;  %v2076_v28 = vld [vmem:[%s3382_s4 + $0x80] sm:$0xf]  ;;  %v2075_v61 = vld [vmem:[%s3382_s4 + $0x7c] sm:$0xf] }
  0xfb   : > { %v2079_v36 = vld [vmem:[%s3382_s4 + $0x8c] sm:$0xf]  ;;  %v2078_v9 = vld [vmem:[%s3382_s4 + $0x88] sm:$0xf]  ;;  %v1907_v6 = vld [vmem:[%s3383_s5] sm:$0xf] }
  0xfc   : > { %v1146_v30 = vadd.f32 %v1106_v55, %v1087_v45  ;;  %v1147_v57 = vadd.f32 %v1107_v3, %v1088_v33  ;;  %v1144_v32 = vadd.f32 %v1142_v63, %v1046_v48  ;;  %v1145_v43 = vadd.f32 %v1143_v50, %v1047_v19  ;;  %v3033_v34 = vpop.permute.xlu1 %1198 }
  0xfd   : > { %v3035_v37 = vpop.permute.xlu0 %1181 }
  0xfe   : > { %v1148_v7 = vadd.f32 %v1146_v30, %v1125_v41  ;;  %v1149_v35 = vadd.f32 %v1147_v57, %v1126_v13 }
 0x100   : > { %v1150_v16 = vadd.f32 %v1148_v7, %v1144_v32  ;;  %v1151_v22 = vadd.f32 %v1149_v35, %v1145_v43  ;;  %v3040_v54 = vpop.permute.xlu1 %1232 }
 0x101   : > { %v3042_v14 = vpop.permute.xlu0 %1215 }
 0x102   : > { %v1158_v47 = vadd.f32 %v1156_v42, %v1150_v16  ;;  %v1159_v26 = vadd.f32 %v1156_v42, %v1151_v22 }
 0x104   : > { %v2943_v39 = vmax.f32 %v1158_v47, 0.0  ;;  %v2945_v27 = vmax.f32 %v1159_v26, 0.0  ;;  %v3044_v21 = vpop.permute.xlu1 %1276 }
 0x105   : > { %v3046_v5 = vpop.permute.xlu0 %1257 }
 0x106   : > { %1164 = vrot.lane.b32.xlu1 %v2945_v27, %s2202_s18  ;;  %1162 = vrot.lane.b32.xlu0 %v2943_v39, %s2202_s18  ;;  %s3441_s18 = smov 111  }
 0x108   : > { %v3048_v8 = vpop.permute.xlu1 %1314 }
 0x109   : > { %v3050_v48 = vpop.permute.xlu0 %1295 }
 0x10a   : > { %1239 = vrot.lane.b32.xlu1 %v2945_v27, %s2203_s29  ;;  %1237 = vrot.lane.b32.xlu0 %v2943_v39, %s2203_s29  ;;  %s3438_s29 = smov 127  }
 0x10c   : > { %v3052_v19 = vpop.permute.xlu1 %1360 }
 0x10d   : > { %v3054_v45 = vpop.permute.xlu0 %1341 }
 0x10e   : > { %1323 = vrot.lane.b32.xlu1 %v2945_v27, %s2204_s19  ;;  %1321 = vrot.lane.b32.xlu0 %v2943_v39, %s2204_s19 }
 0x110   : > { %v3056_v33 = vpop.permute.xlu1 %1398 }
 0x111   : > { %v3058_v56 = vpop.permute.xlu0 %1379 }
 0x112   : > { %1407 = vrot.lane.b32.xlu1 %v2945_v27, %s2205_s14  ;;  %1405 = vrot.lane.b32.xlu0 %v2943_v39, %s2205_s14  ;;  %s1935_s14 = scalar_lea.hbm %s3384_s6, %s2086_s15 }
 0x114   : > { %v3060_v55 = vpop.permute.xlu1 %1444 }
 0x115   : > { %v3062_v3 = vpop.permute.xlu0 %1425 }
 0x116   : > { %1558 = vperm.xlu1 %2135, %v2063_v10   ;;  %1539 = vperm.xlu0 %2136, %v2062_v1   ;;  %v1513_v1 = vrot.slane %v2943_v39, %v2541_v18 }
 0x118   : > { %v3064_v63 = vpop.permute.xlu1 %1482 }
 0x119   : > { %v3066_v50 = vpop.permute.xlu0 %1463 }
 0x11a   : > { %1567 = vrot.lane.b32.xlu1 %v2945_v27, %s3438_s29  ;;  %1565 = vrot.lane.b32.xlu0 %v2943_v39, %s3438_s29 }
 0x11c   : > { %v1521_v41 = vpop.permute.xlu1 %1520 }
 0x11d   : > { %v1502_v13 = vpop.permute.xlu0 %1501 }
 0x11e   : > { %1604 = vperm.xlu1 %2135, %v2065_v51   ;;  %1585 = vperm.xlu0 %2136, %v2064_v38   ;;  %v1517_v51 = vrot.slane %v2945_v27, %v2541_v18  ;;  %v3442_v38 = vld [vmem:[#allocation8_spill] sm:$0xff] }
 0x122   : > { %1649 = vrot.lane.b32.xlu1 %v2943_v39, %s3439_s12  ;;  %1623 = vperm.xlu0 %2136, %v2066_v52  }
 0x126   : > { %1669 = vperm.xlu1 %2135, %v2068_v59   ;;  %1651 = vrot.lane.b32.xlu0 %v2945_v27, %s3439_s12  ;;  %v3443_v59 = vld [vmem:[#allocation9_spill] sm:$0xff] }
 0x12a   : > { %1642 = vperm.xlu1 %2135, %v2067_v4   ;;  %1688 = vperm.xlu0 %2136, %v2069_v40  }
 0x12e   : > { %1733 = vrot.lane.b32.xlu1 %v2943_v39, %s3440_s20  ;;  %1707 = vperm.xlu0 %2136, %v2070_v23  }
 0x132   : > { %1753 = vperm.xlu1 %2135, %v2072_v60   ;;  %1735 = vrot.lane.b32.xlu0 %v2945_v27, %s3440_s20  ;;  %v1494_v60 = vrot.slane %v2943_v39, %v2539_v17 }
 0x136   : > { %1726 = vperm.xlu1 %2135, %v2071_v20   ;;  %1772 = vperm.xlu0 %2136, %v2073_v25   ;;  %v1498_v20 = vrot.slane %v2945_v27, %v2539_v17  ;;  %v3444_v25 = vld [vmem:[#allocation6_spill] sm:$0xff] }
 0x13a   : > { %1817 = vrot.lane.b32.xlu1 %v2943_v39, %s3441_s18  ;;  %1791 = vperm.xlu0 %2136, %v2074_v44  }
 0x13e   : > { %1837 = vperm.xlu1 %2135, %v2076_v28   ;;  %1819 = vrot.lane.b32.xlu0 %v2945_v27, %s3441_s18  ;;  %v3445_v28 = vld [vmem:[#allocation7_spill] sm:$0xff]  ;;  %s2000_s18 = sshll.u32 %s242_s13, 3 }
 0x13f   : > { %s244_s16 = scalar_lea.vmem [#allocation2], %s2000_s18 }
 0x140   : > { %s1937_s29 = sshll.u32 %s244_s16, 4  ;;  %s1938_s29 = int_to_ptr.vmem [resolvable:$true] %s1937_s29 }
 0x141   : > { %s2139_s28 = scalar_lea.vmem %s1938_s29, 128  ;;  %p2146_p0 = scmp.lt.s32.totalorder %s1938_s29, %s2144_s11 }
 0x142   : > { %1810 = vperm.xlu1 %2135, %v2075_v61   ;;  %1856 = vperm.xlu0 %2136, %v2077_v58   ;;  %v3446_v58 = vld [vmem:[#allocation10_spill] sm:$0xff]  ;;  %p2140_p11 = scmp.ne.s32.totalorder %s1938_s29, %s2139_s28 }
 0x144   : > { %p2141_p12 = pnand %p2140_p11, %p2284_p5 }
 0x146   : > { %1894 = vperm.xlu1 %2135, %v2079_v36   ;;  %1875 = vperm.xlu0 %2136, %v2078_v9   ;;  %v3447_v9 = vld [vmem:[#allocation11_spill] sm:$0xff]  ;;  %p2142_p13 = pneg %p2141_p12 }
 0x14a   : > { %1910 = vperm.xlu0 %2136, %v1907_v6  }
 0x178   : > { %v1165_v30 = vpop.permute.xlu1 %1164  ;;  %v1163_v57 = vpop.permute.xlu0 %1162 }
 0x179   : > { %v1166_v42 = vsel %vm260_vm0, %v1163_v57, %v1165_v30  ;;  %v1167_v47 = vsel %vm260_vm0, %v1165_v30, %v1163_v57 }
 0x17a   : > { %v1168_v44 = vmul.f32 %v1167_v47, %v3444_v25  ;;  %v1169_v61 = vmul.f32 %v1166_v42, %v3445_v28  ;;  %v1504_v25 = vmul.f32 %v1502_v13, %v1494_v60  ;;  %v1505_v28 = vmul.f32 %v1502_v13, %v1498_v20 }
 0x17c   : > { %v1240_v32 = vpop.permute.xlu1 %1239  ;;  %v1238_v43 = vpop.permute.xlu0 %1237  ;;  %v1208_v57 = vrot.slane %v1168_v44, %v2562_v29  ;;  %v1212_v30 = vrot.slane %v1169_v61, %v2562_v29 }
 0x17d   : > { %v1241_v16 = vsel %vm348_vm1, %v1238_v43, %v1240_v32  ;;  %v1242_v22 = vsel %vm348_vm1, %v1240_v32, %v1238_v43 }
 0x17e   : > { %v3085_v52 = vmul.f32 %v1242_v22, %v3442_v38  ;;  %v3088_v4 = vmul.f32 %v1241_v16, %v3443_v59  ;;  %v3114_v16 = vmul.f32 %v1521_v41, %v1513_v1  ;;  %v3116_v22 = vmul.f32 %v1521_v41, %v1517_v51 }
 0x17f   : > { %v1191_v38 = vrot.slane %v1168_v44, %v2541_v18  ;;  %v1195_v59 = vrot.slane %v1169_v61, %v2541_v18 }
 0x180   : > { %v1324_v7 = vpop.permute.xlu1 %1323  ;;  %v1322_v35 = vpop.permute.xlu0 %1321  ;;  %3448 = vst [vmem:[#allocation14_spill] sm:$0xff] %v3116_v22  ;;  %v1250_v42 = vrot.slane %v3085_v52, %v2539_v17  ;;  %v1254_v47 = vrot.slane %v3088_v4, %v2539_v17 }
 0x181   : > { %v1325_v26 = vsel %vm446_vm2, %v1322_v35, %v1324_v7  ;;  %v1326_v10 = vsel %vm446_vm2, %v1324_v7, %v1322_v35  ;;  %v3149_v60 = vmul.f32 %v3033_v34, %v1191_v38  ;;  %v3152_v20 = vmul.f32 %v3033_v34, %v1195_v59 }
 0x182   : > { %v3097_v36 = vmul.f32 %v1326_v10, %v3446_v58  ;;  %v3100_v6 = vmul.f32 %v1325_v26, %v3447_v9  ;;  %v1174_v26 = vrot.slane %v1168_v44, %v2539_v17  ;;  %v1178_v10 = vrot.slane %v1169_v61, %v2539_v17 }
 0x183   : > { %v1225_v58 = vrot.slane %v1168_v44, %v2552_v24  ;;  %v1229_v9 = vrot.slane %v1169_v61, %v2552_v24  ;;  %v1269_v38 = vrot.slane %v3085_v52, %v2541_v18  ;;  %v1273_v59 = vrot.slane %v3088_v4, %v2541_v18 }
 0x184   : > { %v1408_v40 = vpop.permute.xlu1 %1407  ;;  %v1406_v23 = vpop.permute.xlu0 %1405  ;;  %v1334_v1 = vrot.slane %v3097_v36, %v2539_v17  ;;  %v1338_v41 = vrot.slane %v3100_v6, %v2539_v17  ;;  %v1185_v13 = vmul.f32 %v3035_v37, %v1178_v10  ;;  %v1395_v12 = vrot.slane %v3100_v6, %v2552_v24 }
 0x185   : > { %v1409_v32 = vsel %vm544_vm3, %v1406_v23, %v1408_v40  ;;  %v1410_v43 = vsel %vm544_vm3, %v1408_v40, %v1406_v23  ;;  %v3449_v40 = vld [vmem:[#allocation13_spill] sm:$0xff]  ;;  %v1236_v34 = vmul.f32 %v3040_v54, %v1229_v9 }
 0x186   : > { %v3131_v51 = vmul.f32 %v1410_v43, %v2622_v53  ;;  %v3134_v23 = vmul.f32 %v1409_v32, %v3449_v40  ;;  %v1260_v53 = vmul.f32 %v3046_v5, %v1250_v42  ;;  %v1261_v43 = vmul.f32 %v3046_v5, %v1254_v47 }
 0x187   : > { %v1184_v32 = vmul.f32 %v3035_v37, %v1174_v26  ;;  %v1344_v61 = vmul.f32 %v3054_v45, %v1334_v1  ;;  %v1345_v5 = vmul.f32 %v3054_v45, %v1338_v41  ;;  %v1307_v42 = vrot.slane %v3085_v52, %v2552_v24 }
 0x188   : > { %v1418_v40 = vrot.slane %v3131_v51, %v2539_v17  ;;  %v1422_v44 = vrot.slane %v3134_v23, %v2539_v17  ;;  %v1311_v37 = vrot.slane %v3088_v4, %v2552_v24  ;;  %v1235_v47 = vmul.f32 %v3040_v54, %v1225_v58 }
 0x189   : > { %v1262_v1 = vadd.f32 %v1260_v53, %v1184_v32  ;;  %v1263_v45 = vadd.f32 %v1261_v43, %v1185_v13  ;;  %v1391_v41 = vrot.slane %v3097_v36, %v2552_v24  ;;  %v1218_v58 = vmul.f32 %v3042_v14, %v1208_v57 }
 0x18a   : > { %v1219_v54 = vmul.f32 %v3042_v14, %v1212_v30  ;;  %v1428_v11 = vmul.f32 %v3062_v3, %v1418_v40  ;;  %v1429_v49 = vmul.f32 %v3062_v3, %v1422_v44  ;;  %v1288_v53 = vrot.slane %v3085_v52, %v2562_v29 }
 0x18b   : > { %v1346_v9 = vadd.f32 %v1344_v61, %v1262_v1  ;;  %v1347_v0 = vadd.f32 %v1345_v5, %v1263_v45  ;;  %v1292_v43 = vrot.slane %v3088_v4, %v2562_v29  ;;  %v1317_v32 = vmul.f32 %v3048_v8, %v1307_v42 }
 0x18c   : > { %v1318_v13 = vmul.f32 %v3048_v8, %v1311_v37  ;;  %v1279_v14 = vmul.f32 %v3044_v21, %v1269_v38  ;;  %v1280_v30 = vmul.f32 %v3044_v21, %v1273_v59  ;;  %v1353_v52 = vrot.slane %v3097_v36, %v2541_v18 }
 0x18d   : > { %v1430_v40 = vadd.f32 %v1428_v11, %v1346_v9  ;;  %v1431_v3 = vadd.f32 %v1429_v49, %v1347_v0  ;;  %v1357_v4 = vrot.slane %v3100_v6, %v2541_v18  ;;  %v1401_v44 = vmul.f32 %v3056_v33, %v1391_v41 }
 0x18e   : > { %v1402_v8 = vmul.f32 %v3056_v33, %v1395_v12  ;;  %v1372_v61 = vrot.slane %v3097_v36, %v2562_v29  ;;  %v1376_v5 = vrot.slane %v3100_v6, %v2562_v29  ;;  %v1319_v49 = vadd.f32 %v1317_v32, %v1235_v47 }
 0x18f   : > { %v3200_v42 = vadd.f32 %v1504_v25, %v1430_v40  ;;  %v3202_v11 = vadd.f32 %v1505_v28, %v1431_v3  ;;  %v1320_v0 = vadd.f32 %v1318_v13, %v1236_v34  ;;  %v1475_v21 = vrot.slane %v3131_v51, %v2552_v24 }
 0x190   : > { %v1479_v37 = vrot.slane %v3134_v23, %v2552_v24  ;;  %v1437_v33 = vrot.slane %v3131_v51, %v2541_v18  ;;  %v1441_v36 = vrot.slane %v3134_v23, %v2541_v18  ;;  %v1298_v6 = vmul.f32 %v3050_v48, %v1288_v53 }
 0x191   : > { %v3138_v35 = vpop.permute.xlu1 %1558  ;;  %v3140_v7 = vpop.permute.xlu0 %1539  ;;  %v1299_v25 = vmul.f32 %v3050_v48, %v1292_v43  ;;  %v1403_v28 = vadd.f32 %v1401_v44, %v1319_v49  ;;  %v1404_v47 = vadd.f32 %v1402_v8, %v1320_v0  ;;  %v1456_v34 = vrot.slane %v3131_v51, %v2562_v29 }
 0x192   : > { %v1460_v59 = vrot.slane %v3134_v23, %v2562_v29  ;;  %v1363_v41 = vmul.f32 %v3052_v19, %v1353_v52  ;;  %v1364_v9 = vmul.f32 %v3052_v19, %v1357_v4  ;;  %v1485_v48 = vmul.f32 %v3064_v63, %v1475_v21 }
 0x193   : > { %v1486_v53 = vmul.f32 %v3064_v63, %v1479_v37  ;;  %v1382_v43 = vmul.f32 %v3058_v56, %v1372_v61  ;;  %v1383_v51 = vmul.f32 %v3058_v56, %v1376_v5  ;;  %v1281_v13 = vadd.f32 %v1279_v14, %v3149_v60 }
 0x194   : > { %v1282_v40 = vadd.f32 %v1280_v30, %v3152_v20  ;;  %v1300_v19 = vadd.f32 %v1298_v6, %v1218_v58  ;;  %v1301_v3 = vadd.f32 %v1299_v25, %v1219_v54  ;;  %v1466_v4 = vmul.f32 %v3066_v50, %v1456_v34 }
 0x195   : > { %v1568_v26 = vpop.permute.xlu1 %1567  ;;  %v1566_v10 = vpop.permute.xlu0 %1565  ;;  %v1467_v56 = vmul.f32 %v3066_v50, %v1460_v59  ;;  %v1365_v44 = vadd.f32 %v1363_v41, %v1281_v13  ;;  %v3450_v60 = vrot.slane %v2943_v39, %v2552_v24  ;;  %v1487_v49 = vadd.f32 %v1485_v48, %v1403_v28 }
 0x196   : > { %v1569_v1 = vsel %vm758_vm4, %v1566_v10, %v1568_v26  ;;  %v1570_v45 = vsel %vm758_vm4, %v1568_v26, %v1566_v10  ;;  %v1447_v26 = vmul.f32 %v3060_v55, %v1437_v33  ;;  %v1448_v10 = vmul.f32 %v3060_v55, %v1441_v36 }
 0x197   : > { %v1571_v52 = vmul.f32 %v1569_v1, %v2669_v2  ;;  %v1572_v63 = vmul.f32 %v1570_v45, %v2672_v31  ;;  %v1366_v8 = vadd.f32 %v1364_v9, %v1282_v40  ;;  %v1561_v20 = vmul.f32 %v3138_v35, %v3450_v60 }
 0x198   : > { %v3451_v55 = vrot.slane %v2945_v27, %v2552_v24  ;;  %v1384_v54 = vadd.f32 %v1382_v43, %v1300_v19  ;;  %v1385_v2 = vadd.f32 %v1383_v51, %v1301_v3  ;;  %v1449_v30 = vadd.f32 %v1447_v26, %v1365_v44 }
 0x199   : > { %v3184_v22 = vpop.permute.xlu1 %1604  ;;  %v3186_v57 = vpop.permute.xlu0 %1585  ;;  %v1450_v61 = vadd.f32 %v1448_v10, %v1366_v8  ;;  %v1488_v0 = vadd.f32 %v1486_v53, %v1404_v47  ;;  %v1597_v21 = vrot.slane %v1571_v52, %v2541_v18  ;;  %v1601_v37 = vrot.slane %v1572_v63, %v2541_v18 }
 0x19a   : > { %v1562_v58 = vmul.f32 %v3138_v35, %v3451_v55  ;;  %v1468_v33 = vadd.f32 %v1466_v4, %v1384_v54  ;;  %v1469_v35 = vadd.f32 %v1467_v56, %v1385_v2  ;;  %v1578_v36 = vrot.slane %v1571_v52, %v2539_v17 }
 0x19b   : > { %v1582_v6 = vrot.slane %v1572_v63, %v2539_v17  ;;  %v3452_v25 = vrot.slane %v2943_v39, %v2562_v29  ;;  %v1563_v41 = vadd.f32 %v1561_v20, %v1487_v49  ;;  %v1525_v48 = vadd.f32 %v3114_v16, %v1449_v30  ;;  %v3454_v39 = vld [vmem:[#allocation14_spill] sm:$0xff]  ;;  %v3455_v20 = vld [vmem:[#allocation17_spill] sm:$0xff] }
 0x19c   : > { %v1564_v9 = vadd.f32 %v1562_v58, %v1488_v0  ;;  %v1526_v53 = vadd.f32 %v3454_v39, %v1450_v61  ;;  %v1607_v43 = vmul.f32 %v3184_v22, %v1597_v21  ;;  %v1588_v51 = vmul.f32 %v3186_v57, %v1578_v36  ;;  %v3456_v58 = vld [vmem:[#allocation18_spill] sm:$0xff] }
 0x19d   : > { %v1650_v38 = vpop.permute.xlu1 %1649  ;;  %v3208_v12 = vpop.permute.xlu0 %1623  ;;  %v1542_v34 = vmul.f32 %v3140_v7, %v3452_v25  ;;  %v1639_v13 = vrot.slane %v1572_v63, %v2552_v24 }
 0x19e   : > { %v1609_v8 = vadd.f32 %v1607_v43, %v1525_v48  ;;  %v1590_v2 = vadd.f32 %v1588_v51, %v3200_v42 }
 0x1a1   : > { %v3230_v32 = vpop.permute.xlu1 %1669  ;;  %v1652_v23 = vpop.permute.xlu0 %1651 }
 0x1a2   : > { %v1653_v50 = vsel %vm856_vm5, %v1650_v38, %v1652_v23  ;;  %v1654_v5 = vsel %vm856_vm5, %v1652_v23, %v1650_v38  ;;  %v3453_v38 = vrot.slane %v2945_v27, %v2562_v29  ;;  %v1608_v27 = vmul.f32 %v3184_v22, %v1601_v37 }
 0x1a3   : > { %v3265_v47 = vmul.f32 %v1653_v50, %v3432_v62  ;;  %v3268_v59 = vmul.f32 %v1654_v5, %v3433_v46  ;;  %v1620_v62 = vrot.slane %v1572_v63, %v2562_v29  ;;  %v1589_v46 = vmul.f32 %v3186_v57, %v1582_v6 }
 0x1a4   : > { %v1543_v28 = vmul.f32 %v3140_v7, %v3453_v38  ;;  %v1616_v7 = vrot.slane %v1571_v52, %v2562_v29  ;;  %v1635_v23 = vrot.slane %v1571_v52, %v2552_v24  ;;  %v1544_v63 = vadd.f32 %v1542_v34, %v1468_v33 }
 0x1a5   : > { %v1643_v14 = vpop.permute.xlu1 %1642  ;;  %v1689_v31 = vpop.permute.xlu0 %1688  ;;  %v1627_v40 = vmul.f32 %v3208_v12, %v1620_v62  ;;  %v1662_v26 = vrot.slane %v3265_v47, %v2539_v17  ;;  %v1666_v22 = vrot.slane %v3268_v59, %v2539_v17  ;;  %v1681_v3 = vrot.slane %v3265_v47, %v2541_v18 }
 0x1a6   : > { %v1626_v16 = vmul.f32 %v3208_v12, %v1616_v7  ;;  %v1685_v57 = vrot.slane %v3268_v59, %v2541_v18  ;;  %v1545_v4 = vadd.f32 %v1543_v28, %v1469_v35  ;;  %v1645_v56 = vmul.f32 %v1643_v14, %v1635_v23 }
 0x1a7   : > { %v1646_v44 = vmul.f32 %v1643_v14, %v1639_v13  ;;  %v1610_v60 = vadd.f32 %v1608_v27, %v1526_v53  ;;  %v1591_v30 = vadd.f32 %v1589_v46, %v3202_v11  ;;  %v1672_v0 = vmul.f32 %v3230_v32, %v1662_v26 }
 0x1a8   : > { %v1628_v61 = vadd.f32 %v1626_v16, %v1544_v63  ;;  %v1629_v50 = vadd.f32 %v1627_v40, %v1545_v4  ;;  %v1673_v14 = vmul.f32 %v3230_v32, %v1666_v22  ;;  %v1691_v21 = vmul.f32 %v1689_v31, %v1681_v3  ;;  %v3458_v4 = vld [vmem:[#allocation20_spill] sm:$0xff] }
 0x1a9   : > { %v1734_v1 = vpop.permute.xlu1 %1733  ;;  %v1708_v45 = vpop.permute.xlu0 %1707  ;;  %v1692_v37 = vmul.f32 %v1689_v31, %v1685_v57  ;;  %v1647_v33 = vadd.f32 %v1645_v56, %v1563_v41  ;;  %v1648_v35 = vadd.f32 %v1646_v44, %v1564_v9  ;;  %v1700_v36 = vrot.slane %v3265_v47, %v2562_v29 }
 0x1aa   : > { %v1704_v42 = vrot.slane %v3268_v59, %v2562_v29  ;;  %v1719_v38 = vrot.slane %v3265_v47, %v2552_v24  ;;  %v1723_v28 = vrot.slane %v3268_v59, %v2552_v24  ;;  %v1693_v9 = vadd.f32 %v1691_v21, %v1609_v8 }
 0x1ab   : > { %v1710_v31 = vmul.f32 %v1708_v45, %v1700_v36  ;;  %v1694_v48 = vadd.f32 %v1692_v37, %v1610_v60  ;;  %v1674_v39 = vadd.f32 %v1672_v0, %v1590_v2  ;;  %v1675_v53 = vadd.f32 %v1673_v14, %v1591_v30 }
 0x1ac   : > { %v1711_v34 = vmul.f32 %v1708_v45, %v1704_v42 }
 0x1ad   : > { %v1754_v10 = vpop.permute.xlu1 %1753  ;;  %v1736_v19 = vpop.permute.xlu0 %1735  ;;  %v1712_v23 = vadd.f32 %v1710_v31, %v1628_v61 }
 0x1ae   : > { %v1737_v52 = vsel %vm954_vm6, %v1734_v1, %v1736_v19  ;;  %v1738_v12 = vsel %vm954_vm6, %v1736_v19, %v1734_v1  ;;  %v1713_v59 = vadd.f32 %v1711_v34, %v1629_v50 }
 0x1af   : > { %v3295_v55 = vmul.f32 %v1737_v52, %v3455_v20  ;;  %v3298_v54 = vmul.f32 %v1738_v12, %v3456_v58  ;;  %v3457_v12 = vld [vmem:[#allocation19_spill] sm:$0xff] }
 0x1b1   : > { %v1727_v5 = vpop.permute.xlu1 %1726  ;;  %v1773_v49 = vpop.permute.xlu0 %1772  ;;  %v1746_v11 = vrot.slane %v3295_v55, %v2539_v17  ;;  %v1750_v6 = vrot.slane %v3298_v54, %v2539_v17  ;;  %v1765_v25 = vrot.slane %v3295_v55, %v2541_v18  ;;  %v1769_v32 = vrot.slane %v3298_v54, %v2541_v18 }
 0x1b2   : > { %v1729_v43 = vmul.f32 %v1727_v5, %v1719_v38  ;;  %v1730_v27 = vmul.f32 %v1727_v5, %v1723_v28  ;;  %v1784_v7 = vrot.slane %v3295_v55, %v2562_v29  ;;  %v1788_v45 = vrot.slane %v3298_v54, %v2562_v29 }
 0x1b3   : > { %v1775_v62 = vmul.f32 %v1773_v49, %v1765_v25  ;;  %v1776_v51 = vmul.f32 %v1773_v49, %v1769_v32  ;;  %v1756_v47 = vmul.f32 %v1754_v10, %v1746_v11  ;;  %v1757_v46 = vmul.f32 %v1754_v10, %v1750_v6 }
 0x1b4   : > { %v1803_v40 = vrot.slane %v3295_v55, %v2552_v24  ;;  %v1807_v26 = vrot.slane %v3298_v54, %v2552_v24  ;;  %v1731_v52 = vadd.f32 %v1729_v43, %v1647_v33  ;;  %v1732_v10 = vadd.f32 %v1730_v27, %v1648_v35 }
 0x1b5   : > { %v1818_v1 = vpop.permute.xlu1 %1817  ;;  %v1792_v41 = vpop.permute.xlu0 %1791  ;;  %v1777_v44 = vadd.f32 %v1775_v62, %v1693_v9  ;;  %v1778_v8 = vadd.f32 %v1776_v51, %v1694_v48  ;;  %v1758_v60 = vadd.f32 %v1756_v47, %v1674_v39  ;;  %v1759_v20 = vadd.f32 %v1757_v46, %v1675_v53  ;;  %v2138_v46 = vld [vmem:[%s2305_s17] sm:$0xff]  ;;  %s2145_s17 = scalar_lea.vmem %s2144_s11, 256 }
 0x1b6   : > { %v1794_v22 = vmul.f32 %v1792_v41, %v1784_v7  ;;  %v1795_v19 = vmul.f32 %v1792_v41, %v1788_v45  ;;  %p2147_p1 = scmp.lt.s32.totalorder %s2145_s17, %s2139_s28 }
 0x1b8   : > { %v1796_v61 = vadd.f32 %v1794_v22, %v1712_v23  ;;  %v1797_v50 = vadd.f32 %v1795_v19, %v1713_v59  ;;  %v3459_v59 = vld [vmem:[#allocation5_spill] sm:$0xff]  ;;  %p2148_p2 = por %p2147_p1, %p2146_p0 }
 0x1b9   : > { %v1838_v13 = vpop.permute.xlu1 %1837  ;;  %v1820_v16 = vpop.permute.xlu0 %1819 }
 0x1ba   : > { %v1821_v3 = vsel %vm1052_vm7, %v1818_v1, %v1820_v16  ;;  %v1822_v57 = vsel %vm1052_vm7, %v1820_v16, %v1818_v1  ;;  %p2149_p3 = pnand %p2148_p2, %p2142_p13 }
 0x1bb   : > { %v1823_v63 = vmul.f32 %v1821_v3, %v3457_v12  ;;  %v1824_v56 = vmul.f32 %v1822_v57, %v3458_v4 }
 0x1bd   : > { %v1830_v55 = vrot.slane %v1823_v63, %v2539_v17  ;;  %v1834_v58 = vrot.slane %v1824_v56, %v2539_v17  ;;  %v1811_v54 = vpop.permute.xlu1 %1810  ;;  %v1849_v2 = vrot.slane %v1823_v63, %v2541_v18  ;;  %v1853_v15 = vrot.slane %v1824_v56, %v2541_v18  ;;  %v1857_v30 = vpop.permute.xlu0 %1856 }
 0x1be   : > { %v1813_v5 = vmul.f32 %v1811_v54, %v1803_v40  ;;  %v1814_v49 = vmul.f32 %v1811_v54, %v1807_v26  ;;  %v1887_v33 = vrot.slane %v1823_v63, %v2552_v24  ;;  %v1891_v35 = vrot.slane %v1824_v56, %v2552_v24 }
 0x1bf   : > { %v1840_v0 = vmul.f32 %v1838_v13, %v1830_v55  ;;  %v1841_v14 = vmul.f32 %v1838_v13, %v1834_v58  ;;  %v1859_v21 = vmul.f32 %v1857_v30, %v1849_v2  ;;  %v1860_v37 = vmul.f32 %v1857_v30, %v1853_v15 }
 0x1c0   : > { %v1868_v17 = vrot.slane %v1823_v63, %v2562_v29  ;;  %v1872_v36 = vrot.slane %v1824_v56, %v2562_v29  ;;  %v1815_v9 = vadd.f32 %v1813_v5, %v1731_v52  ;;  %v1816_v24 = vadd.f32 %v1814_v49, %v1732_v10 }
 0x1c1   : > { %v1842_v42 = vadd.f32 %v1840_v0, %v1758_v60  ;;  %v1843_v18 = vadd.f32 %v1841_v14, %v1759_v20  ;;  %v1861_v11 = vadd.f32 %v1859_v21, %v1777_v44  ;;  %v1862_v6 = vadd.f32 %v1860_v37, %v1778_v8  ;;  %v1895_v25 = vpop.permute.xlu1 %1894  ;;  %v1876_v32 = vpop.permute.xlu0 %1875 }
 0x1c2   : > { %v1897_v31 = vmul.f32 %v1895_v25, %v1887_v33  ;;  %v1898_v34 = vmul.f32 %v1895_v25, %v1891_v35  ;;  %v1878_v38 = vmul.f32 %v1876_v32, %v1868_v17  ;;  %v1879_v28 = vmul.f32 %v1876_v32, %v1872_v36 }
 0x1c3   : > { %v1901_v1 = vadd.f32 %v1861_v11, %v1842_v42  ;;  %v1902_v41 = vadd.f32 %v1862_v6, %v1843_v18 }
 0x1c4   : > { %v1880_v48 = vadd.f32 %v1878_v38, %v1796_v61  ;;  %v1881_v39 = vadd.f32 %v1879_v28, %v1797_v50  ;;  %v1899_v29 = vadd.f32 %v1897_v31, %v1815_v9  ;;  %v1900_v53 = vadd.f32 %v1898_v34, %v1816_v24 }
 0x1c5   : > { %v1911_v62 = vpop.permute.xlu0 %1910 }
 0x1c6   : > { %v1903_v43 = vadd.f32 %v1901_v1, %v1880_v48  ;;  %v1904_v27 = vadd.f32 %v1902_v41, %v1881_v39 }
 0x1c8   : > { %v1905_v7 = vadd.f32 %v1903_v43, %v1899_v29  ;;  %v1906_v45 = vadd.f32 %v1904_v27, %v1900_v53 }
 0x1ca   : > { %v1913_v51 = vadd.f32 %v1911_v62, %v1905_v7  ;;  %v1914_v47 = vadd.f32 %v1911_v62, %v1906_v45 }
 0x1cc   : > { %v1915_v23 = vadd.f32 %v2138_v46, %v1913_v51  ;;  %v1916_v13 = vadd.f32 %v1914_v47, %v3459_v59 }
 0x1ce   : > { %v1919_v16 = vcombine.low %v1915_v23, %v1916_v13 }
 0x1d0   : > { %1921 = vst [vmem:[%s244_s16] sm:$0xff] %v1919_v16 }
 0x1d1   : > { %2152 = shalt.err (!%p2149_p3)
}
 0x1d2   : > { %s2153_s12 = scalar_lea.hbm %s1935_s14, 128  ;;  %s2157_s13 = scalar_lea.hbm %s3384_s6, 256 }
 0x1d3   : > { %p2154_p4 = scmp.ne.s32.totalorder %s1935_s14, %s2153_s12  ;;  %p2158_p9 = scmp.lt.s32.totalorder %s1935_s14, %s3384_s6 }
 0x1d4   : > { %p2159_p10 = scmp.lt.s32.totalorder %s2157_s13, %s2153_s12 }
 0x1d5   : > { %p2155_p7 = pnand %p2154_p4, %p2284_p5 }
 0x1d6   : > { %p2160_p11 = por %p2159_p10, %p2158_p9 }
 0x1d7   : > { %p2156_p8 = pneg %p2155_p7 }
 0x1d9   : > { %p2161_p12 = pnand %p2160_p11, %p2156_p8 }
 0x1db   : > { %2164 = shalt.err (!%p2161_p12)
}
 0x1dc   : > { %2087 = dma.vmem_to_hbm [thread:$0]  (%p2284_p5), %s1938_s29, 128, %s1935_s14, %s1923_s26  }
 0x1dd PF: > { %p2093_p13 = scmp.ge.s32.totalorder %s2199_s24, 2  ;;  %s1949_s16 = sand.u32 1, %s2187_s21  }
 0x1de   : > { %s1950_s19 = scalar_lea.sflag [#allocation3], %s1949_s16 }
 0x1df   : > { %p2090_p0 = pnand %p2093_p13, %p2288_p6 }
 0x1e1   : > { %p2091_p1 = pneg %p2090_p0 }
 0x1e3   : > { %2182 = dma.done.wait (%p2091_p1), %s1950_s19, 128  }
 0x1e4   : > { %2184 = vsyncadd (%p2091_p1), %s1950_s19, 4294967168  ;;  %p16_p2 = scmp.ge.s32.totalorder %s2271_s27, 4   ;;  %s3460_s21 = smov %s2191_s22 }
 0x1e5   : > { %s3461_s22 = smov %s2195_s23  ;;  %s3462_s23 = smov %s2282_s30 }
 0x1e6   : > { %s3463_s24 = smov %s2271_s27  ;;  %18 = sbr.rel (!%p16_p2) target bundleno = 3 (0x3), region = 156 }
 0x1eb   :  { %1955 = vsyncpa [#allocation3], 1 }
 0x1ec   :  { %1957 = vsyncpa [#allocation3 + $0x1], 1 }

</bundles_post_ra>
